<compile_context>
chip_gen: v5e
topology: v5e:2x2
jax: 0.10.0
libtpu: 0.0.40
codegen_flags: <defaults>
</compile_context>

<pallas_src>
import math

import jax
import jax.numpy as jnp
from jax.experimental import pallas as pl
from jax.experimental.pallas import tpu as pltpu


# ---------------- model dimensions (small, consistent with the module) ----------------
B = 2          # batch
S = 8          # sequence length
D = 32         # d_model (== EncoderLayer.size)
H = 4          # attention heads
DK = D // H    # per-head dim
DFF = 64       # feed-forward hidden
EPS = 1e-6
PACK_W = 3 * D  # lane width of the packed small-parameter slab (96)


def _layernorm(x, a, b, d):
    # matches the reference LayerNorm: unbiased std (divide by d-1), eps added to the std.
    # exact divide (not approx reciprocal) to stay well inside the 1e-4 tolerance.
    mean = jnp.mean(x, axis=-1, keepdims=True)
    diff = x - mean
    var = jnp.sum(diff * diff, axis=-1, keepdims=True) * (1.0 / (d - 1))
    std = jnp.sqrt(var)
    return a * diff / (std + EPS) + b


def encoder_layer_kernel(
    mask_ref,        # (B, S)        1 = keep, 0 = masked
    x_ref,           # (B*S, D)
    wqkv_ref,        # (D, 3D)       fused Q|K|V projection
    wo_ref,          # (D, D)
    w1_ref,          # (D, DFF)
    w2_ref,          # (DFF, D)
    small_ref,       # (8, 96)       packed 1-row params (single DMA)
    o_ref,           # (B*S, D)
):
    x = x_ref[...]                                   # (B*S, D)

    small = small_ref[...]
    bqkv = small[0:1, 0:3 * D]
    bo = small[1:2, 0:D]
    a1 = small[2:3, 0:D]
    b1 = small[3:4, 0:D]
    a2 = small[4:5, 0:D]
    b2 = small[5:6, 0:D]
    b1f = small[6:7, 0:DFF]
    b2f = small[7:8, 0:D]

    # ---- sublayer 0: self-attention on LN1(x), residual add (dropout = 0) ----
    ln1 = _layernorm(x, a1, b1, D)
    # single fused QKV matmul: one wide N=3D push instead of three narrow ones
    qkv = jnp.dot(ln1, wqkv_ref[...], preferred_element_type=jnp.float32) + bqkv
    q = qkv[:, 0:D]
    k = qkv[:, D:2 * D]
    v = qkv[:, 2 * D:3 * D]

    wo = wo_ref[...]
    w1 = w1_ref[...]
    w2 = w2_ref[...]

    # additive mask bias computed ONCE for the whole block (hoisted out of all loops)
    bias_all = jnp.where(mask_ref[...] == 0.0, -1e9, 0.0)       # (B, S)
    inv_sqrt_dk = 1.0 / math.sqrt(DK)

    for bb in range(B):                              # static unrolled over batches
        r0 = bb * S
        bias_bb = bias_all[bb:bb + 1, :]             # (1, S), broadcasts over query rows
        attn = jnp.zeros((S, D), jnp.float32)
        for h in range(H):                           # static unrolled over heads
            lo = h * DK
            qh = q[r0:r0 + S, lo:lo + DK]            # (S, DK)
            kh = k[r0:r0 + S, lo:lo + DK]
            vh = v[r0:r0 + S, lo:lo + DK]
            # contract last axes of q and k directly -> no explicit kh.T transpose
            scores = jax.lax.dot_general(
                qh, kh, (((1,), (1,)), ((), ())),
                preferred_element_type=jnp.float32) * inv_sqrt_dk + bias_bb    # (S, S)
            scores = scores - jnp.max(scores, axis=-1, keepdims=True)
            p = jnp.exp(scores)
            p = p / jnp.sum(p, axis=-1, keepdims=True)
            oh = jnp.dot(p, vh, preferred_element_type=jnp.float32)            # (S, DK)
            # fold the output projection per head: concat(heads) @ wo == sum_h oh_h @ wo[h]
            attn = attn + jnp.dot(oh, wo[lo:lo + DK, :],
                                  preferred_element_type=jnp.float32)          # (S, D)

        x1 = x[r0:r0 + S, :] + attn + bo             # residual + output-projection bias

        # ---- sublayer 1: position-wise feed-forward on LN2(x1), residual add ----
        ln2 = _layernorm(x1, a2, b2, D)
        hdd = jnp.maximum(jnp.dot(ln2, w1, preferred_element_type=jnp.float32) + b1f, 0.0)
        ff = jnp.dot(hdd, w2, preferred_element_type=jnp.float32) + b2f

        o_ref[r0:r0 + S, :] = (x1 + ff).astype(o_ref.dtype)


def prepare_params(params):
    """One-time, host-side parameter prep (reused across calls):
    fuse Q/K/V projection weights and pack all 1-row params into one (8, 96) slab."""
    (a1, b1, wq, bq, wk, bk, wv, bv, wo, bo, a2, b2, w1, b1f, w2, b2f) = params
    wqkv = jnp.concatenate([wq, wk, wv], axis=1)     # (D, 3D)
    bqkv = jnp.concatenate([bq, bk, bv], axis=1)     # (1, 3D)
    rows = []
    for p in (bqkv, bo, a1, b1, a2, b2, b1f, b2f):
        rows.append(jnp.pad(p, ((0, 0), (0, PACK_W - p.shape[1]))))
    small = jnp.concatenate(rows, axis=0)            # (8, 96)
    return wqkv, wo, w1, w2, small


@jax.jit
def encoder_layer(x, mask, prepped):
    wqkv, wo, w1, w2, small = prepped
    # whole problem (<100 KB) fits trivially in VMEM on every generation -> no grid,
    # single invocation processing all B*S rows (no per-step pipeline overhead).
    x2 = x.reshape(B * S, D)
    mask2 = mask.reshape(B, S)
    vmem = pl.BlockSpec(memory_space=pltpu.MemorySpace.VMEM)
    out2 = pl.pallas_call(
        encoder_layer_kernel,
        out_shape=jax.ShapeDtypeStruct((B * S, D), jnp.float32),
        in_specs=[vmem] * 7,
        out_specs=vmem,
    )(mask2, x2, wqkv, wo, w1, w2, small)
    return out2.reshape(B, S, D)


# ---------------- pure-JAX reference (mirrors the PyTorch module) ----------------
def _ref_layernorm(x, a, b):
    mean = jnp.mean(x, axis=-1, keepdims=True)
    std = jnp.sqrt(jnp.sum((x - mean) ** 2, axis=-1, keepdims=True) / (x.shape[-1] - 1))
    return a * (x - mean) / (std + EPS) + b


def encoder_layer_ref(x, mask, params):
    (a1, b1, wq, bq, wk, bk, wv, bv, wo, bo, a2, b2, w1, b1f, w2, b2f) = params
    ln1 = _ref_layernorm(x, a1, b1)
    q = ln1 @ wq + bq
    k = ln1 @ wk + bk
    v = ln1 @ wv + bv
    qh = q.reshape(B, S, H, DK).transpose(0, 2, 1, 3)
    kh = k.reshape(B, S, H, DK).transpose(0, 2, 1, 3)
    vh = v.reshape(B, S, H, DK).transpose(0, 2, 1, 3)
    scores = jnp.einsum("bhqd,bhkd->bhqk", qh, kh) / math.sqrt(DK)
    scores = jnp.where(mask[:, None, :, :] == 0, -1e9, scores)
    p = jax.nn.softmax(scores, axis=-1)
    attn = jnp.einsum("bhqk,bhkd->bhqd", p, vh).transpose(0, 2, 1, 3).reshape(B, S, D)
    attn = attn @ wo + bo
    x1 = x + attn
    ln2 = _ref_layernorm(x1, a2, b2)
    ff = jnp.maximum(ln2 @ w1 + b1f, 0.0) @ w2 + b2f
    return x1 + ff


if __name__ == "__main__":
    keys = jax.random.split(jax.random.PRNGKey(0), 13)

    def init(k, shape, scale=0.1):
        return (scale * jax.random.normal(k, shape)).astype(jnp.float32)

    # parameters (deterministic, synthetic)
    a1 = jnp.ones((1, D), jnp.float32); b1 = jnp.zeros((1, D), jnp.float32)
    a2 = jnp.ones((1, D), jnp.float32); b2 = jnp.zeros((1, D), jnp.float32)
    wq = init(keys[0], (D, D));   bq = init(keys[1], (1, D))
    wk = init(keys[2], (D, D));   bk = init(keys[3], (1, D))
    wv = init(keys[4], (D, D));   bv = init(keys[5], (1, D))
    wo = init(keys[6], (D, D));   bo = init(keys[7], (1, D))
    w1 = init(keys[8], (D, DFF)); b1f = init(keys[9], (1, DFF))
    w2 = init(keys[10], (DFF, D)); b2f = init(keys[11], (1, D))
    params = (a1, b1, wq, bq, wk, bk, wv, bv, wo, bo, a2, b2, w1, b1f, w2, b2f)

    # inputs
    x = jax.random.normal(keys[12], (B, S, D), jnp.float32)
    # src mask (B, 1, S): mask out the last 2 positions of batch 1, keep all of batch 0
    mask = jnp.ones((B, 1, S), jnp.float32)
    mask = mask.at[1, 0, S - 2:].set(0.0)

    prepped = prepare_params(params)   # one-time weight prep (fused QKV + packed small params)
    out = jax.block_until_ready(encoder_layer(x, mask, prepped))
    ref = encoder_layer_ref(x, mask, params)
    err = float(jnp.max(jnp.abs(out - ref)))
    assert jnp.allclose(out, ref, atol=1e-4, rtol=1e-4), err

    # TODO(synk): dropout is fixed to rate 0.0 (eval mode); stochastic dropout would need pltpu.prng_*.
    print("KERNEL_OK")
</pallas_src>

<mosaic_0001>
module attributes {stable_mosaic.version = 11 : i64} {
  func.func @encoder_layer_kernel(%arg0: memref<2x8xf32, #tpu.memory_space<vmem>>, %arg1: memref<16x32xf32, #tpu.memory_space<vmem>>, %arg2: memref<32x96xf32, #tpu.memory_space<vmem>>, %arg3: memref<32x32xf32, #tpu.memory_space<vmem>>, %arg4: memref<32x64xf32, #tpu.memory_space<vmem>>, %arg5: memref<64x32xf32, #tpu.memory_space<vmem>>, %arg6: memref<8x96xf32, #tpu.memory_space<vmem>>, %arg7: memref<16x32xf32, #tpu.memory_space<vmem>>) attributes {dimension_semantics = [], scalar_prefetch = 0 : i64, scratch_operands = 0 : i64, tpu.core_type = #tpu.core_type<tc>} {
    %c0 = arith.constant 0 : index
    %c0_0 = arith.constant 0 : index
    %0 = vector.load %arg1[%c0, %c0_0] : memref<16x32xf32, #tpu.memory_space<vmem>>, vector<16x32xf32>
    %c0_1 = arith.constant 0 : index
    %c0_2 = arith.constant 0 : index
    %1 = vector.load %arg6[%c0_1, %c0_2] : memref<8x96xf32, #tpu.memory_space<vmem>>, vector<8x96xf32>
    %2 = vector.extract_strided_slice %1 {offsets = [0, 0], sizes = [1, 96], strides = [1, 1]} : vector<8x96xf32> to vector<1x96xf32>
    %3 = vector.extract_strided_slice %1 {offsets = [1, 0], sizes = [1, 32], strides = [1, 1]} : vector<8x96xf32> to vector<1x32xf32>
    %4 = vector.extract_strided_slice %1 {offsets = [2, 0], sizes = [1, 32], strides = [1, 1]} : vector<8x96xf32> to vector<1x32xf32>
    %5 = vector.extract_strided_slice %1 {offsets = [3, 0], sizes = [1, 32], strides = [1, 1]} : vector<8x96xf32> to vector<1x32xf32>
    %6 = vector.extract_strided_slice %1 {offsets = [4, 0], sizes = [1, 32], strides = [1, 1]} : vector<8x96xf32> to vector<1x32xf32>
    %7 = vector.extract_strided_slice %1 {offsets = [5, 0], sizes = [1, 32], strides = [1, 1]} : vector<8x96xf32> to vector<1x32xf32>
    %8 = vector.extract_strided_slice %1 {offsets = [6, 0], sizes = [1, 64], strides = [1, 1]} : vector<8x96xf32> to vector<1x64xf32>
    %9 = vector.extract_strided_slice %1 {offsets = [7, 0], sizes = [1, 32], strides = [1, 1]} : vector<8x96xf32> to vector<1x32xf32>
    %cst = arith.constant dense<0.000000e+00> : vector<16xf32>
    %10 = vector.multi_reduction <add>, %0, %cst [1] : vector<16x32xf32> to vector<16xf32>
    %11 = vector.shape_cast %10 : vector<16xf32> to vector<16x1xf32>
    %cst_3 = arith.constant 3.200000e+01 : f32
    %12 = vector.broadcast %cst_3 : f32 to vector<16x1xf32>
    %13 = arith.divf %11, %12 : vector<16x1xf32>
    %14 = vector.broadcast %13 : vector<16x1xf32> to vector<16x32xf32>
    %15 = arith.subf %0, %14 : vector<16x32xf32>
    %16 = arith.mulf %15, %15 : vector<16x32xf32>
    %cst_4 = arith.constant dense<0.000000e+00> : vector<16xf32>
    %17 = vector.multi_reduction <add>, %16, %cst_4 [1] : vector<16x32xf32> to vector<16xf32>
    %18 = vector.shape_cast %17 : vector<16xf32> to vector<16x1xf32>
    %cst_5 = arith.constant 0.0322580636 : f32
    %19 = vector.broadcast %cst_5 : f32 to vector<16x1xf32>
    %20 = arith.mulf %18, %19 : vector<16x1xf32>
    %21 = math.sqrt %20 : vector<16x1xf32>
    %22 = vector.broadcast %4 : vector<1x32xf32> to vector<16x32xf32>
    %23 = arith.mulf %22, %15 : vector<16x32xf32>
    %cst_6 = arith.constant 9.99999997E-7 : f32
    %24 = vector.broadcast %cst_6 : f32 to vector<16x1xf32>
    %25 = arith.addf %21, %24 : vector<16x1xf32>
    %26 = vector.broadcast %25 : vector<16x1xf32> to vector<16x32xf32>
    %27 = arith.divf %23, %26 : vector<16x32xf32>
    %28 = vector.broadcast %5 : vector<1x32xf32> to vector<16x32xf32>
    %29 = arith.addf %27, %28 : vector<16x32xf32>
    %c0_7 = arith.constant 0 : index
    %c0_8 = arith.constant 0 : index
    %30 = vector.load %arg2[%c0_7, %c0_8] : memref<32x96xf32, #tpu.memory_space<vmem>>, vector<32x96xf32>
    %cst_9 = arith.constant dense<0.000000e+00> : vector<16x96xf32>
    %31 = tpu.matmul %29, %30, %cst_9 {dimension_numbers = #tpu.dot_dimension_numbers<[1], [0], [0], [1], [0, 0, 1, 1], [], []>} : vector<16x32xf32>, vector<32x96xf32>, vector<16x96xf32> -> vector<16x96xf32>
    %32 = vector.broadcast %2 : vector<1x96xf32> to vector<16x96xf32>
    %33 = arith.addf %31, %32 : vector<16x96xf32>
    %34 = vector.extract_strided_slice %33 {offsets = [0, 0], sizes = [16, 32], strides = [1, 1]} : vector<16x96xf32> to vector<16x32xf32>
    %35 = vector.extract_strided_slice %33 {offsets = [0, 32], sizes = [16, 32], strides = [1, 1]} : vector<16x96xf32> to vector<16x32xf32>
    %36 = vector.extract_strided_slice %33 {offsets = [0, 64], sizes = [16, 32], strides = [1, 1]} : vector<16x96xf32> to vector<16x32xf32>
    %c0_10 = arith.constant 0 : index
    %c0_11 = arith.constant 0 : index
    %37 = vector.load %arg3[%c0_10, %c0_11] : memref<32x32xf32, #tpu.memory_space<vmem>>, vector<32x32xf32>
    %c0_12 = arith.constant 0 : index
    %c0_13 = arith.constant 0 : index
    %38 = vector.load %arg4[%c0_12, %c0_13] : memref<32x64xf32, #tpu.memory_space<vmem>>, vector<32x64xf32>
    %c0_14 = arith.constant 0 : index
    %c0_15 = arith.constant 0 : index
    %39 = vector.load %arg5[%c0_14, %c0_15] : memref<64x32xf32, #tpu.memory_space<vmem>>, vector<64x32xf32>
    %c0_16 = arith.constant 0 : index
    %c0_17 = arith.constant 0 : index
    %40 = vector.load %arg0[%c0_16, %c0_17] : memref<2x8xf32, #tpu.memory_space<vmem>>, vector<2x8xf32>
    %cst_18 = arith.constant 0.000000e+00 : f32
    %41 = vector.broadcast %cst_18 : f32 to vector<2x8xf32>
    %42 = arith.cmpf oeq, %40, %41 : vector<2x8xf32>
    %cst_19 = arith.constant -1.000000e+09 : f32
    %cst_20 = arith.constant 0.000000e+00 : f32
    %43 = vector.broadcast %cst_19 : f32 to vector<2x8xf32>
    %44 = vector.broadcast %cst_20 : f32 to vector<2x8xf32>
    %45 = arith.select %42, %43, %44 : vector<2x8xi1>, vector<2x8xf32>
    %46 = vector.extract_strided_slice %45 {offsets = [0, 0], sizes = [1, 8], strides = [1, 1]} : vector<2x8xf32> to vector<1x8xf32>
    %cst_21 = arith.constant 0.000000e+00 : f32
    %47 = vector.broadcast %cst_21 : f32 to vector<8x32xf32>
    %48 = vector.extract_strided_slice %34 {offsets = [0, 0], sizes = [8, 8], strides = [1, 1]} : vector<16x32xf32> to vector<8x8xf32>
    %49 = vector.extract_strided_slice %35 {offsets = [0, 0], sizes = [8, 8], strides = [1, 1]} : vector<16x32xf32> to vector<8x8xf32>
    %50 = vector.extract_strided_slice %36 {offsets = [0, 0], sizes = [8, 8], strides = [1, 1]} : vector<16x32xf32> to vector<8x8xf32>
    %cst_22 = arith.constant dense<0.000000e+00> : vector<8x8xf32>
    %51 = tpu.matmul %48, %49, %cst_22 {dimension_numbers = #tpu.dot_dimension_numbers<[1], [1], [0], [0], [0, 0, 1, 0], [], []>} : vector<8x8xf32>, vector<8x8xf32>, vector<8x8xf32> -> vector<8x8xf32>
    %cst_23 = arith.constant 0.353553385 : f32
    %52 = vector.broadcast %cst_23 : f32 to vector<8x8xf32>
    %53 = arith.mulf %51, %52 : vector<8x8xf32>
    %54 = vector.broadcast %46 : vector<1x8xf32> to vector<8x8xf32>
    %55 = arith.addf %53, %54 : vector<8x8xf32>
    %cst_24 = arith.constant dense<0xFF800000> : vector<8xf32>
    %56 = vector.multi_reduction <maximumf>, %55, %cst_24 [1] : vector<8x8xf32> to vector<8xf32>
    %57 = vector.shape_cast %56 : vector<8xf32> to vector<8x1xf32>
    %58 = vector.broadcast %57 : vector<8x1xf32> to vector<8x8xf32>
    %59 = arith.subf %55, %58 : vector<8x8xf32>
    %60 = math.exp %59 : vector<8x8xf32>
    %cst_25 = arith.constant dense<0.000000e+00> : vector<8xf32>
    %61 = vector.multi_reduction <add>, %60, %cst_25 [1] : vector<8x8xf32> to vector<8xf32>
    %62 = vector.shape_cast %61 : vector<8xf32> to vector<8x1xf32>
    %63 = vector.broadcast %62 : vector<8x1xf32> to vector<8x8xf32>
    %64 = arith.divf %60, %63 : vector<8x8xf32>
    %cst_26 = arith.constant dense<0.000000e+00> : vector<8x8xf32>
    %65 = tpu.matmul %64, %50, %cst_26 {dimension_numbers = #tpu.dot_dimension_numbers<[1], [0], [0], [1], [0, 0, 1, 1], [], []>} : vector<8x8xf32>, vector<8x8xf32>, vector<8x8xf32> -> vector<8x8xf32>
    %66 = vector.extract_strided_slice %37 {offsets = [0, 0], sizes = [8, 32], strides = [1, 1]} : vector<32x32xf32> to vector<8x32xf32>
    %cst_27 = arith.constant dense<0.000000e+00> : vector<8x32xf32>
    %67 = tpu.matmul %65, %66, %cst_27 {dimension_numbers = #tpu.dot_dimension_numbers<[1], [0], [0], [1], [0, 0, 1, 1], [], []>} : vector<8x8xf32>, vector<8x32xf32>, vector<8x32xf32> -> vector<8x32xf32>
    %68 = arith.addf %47, %67 : vector<8x32xf32>
    %69 = vector.extract_strided_slice %34 {offsets = [0, 8], sizes = [8, 8], strides = [1, 1]} : vector<16x32xf32> to vector<8x8xf32>
    %70 = vector.extract_strided_slice %35 {offsets = [0, 8], sizes = [8, 8], strides = [1, 1]} : vector<16x32xf32> to vector<8x8xf32>
    %71 = vector.extract_strided_slice %36 {offsets = [0, 8], sizes = [8, 8], strides = [1, 1]} : vector<16x32xf32> to vector<8x8xf32>
    %cst_28 = arith.constant dense<0.000000e+00> : vector<8x8xf32>
    %72 = tpu.matmul %69, %70, %cst_28 {dimension_numbers = #tpu.dot_dimension_numbers<[1], [1], [0], [0], [0, 0, 1, 0], [], []>} : vector<8x8xf32>, vector<8x8xf32>, vector<8x8xf32> -> vector<8x8xf32>
    %cst_29 = arith.constant 0.353553385 : f32
    %73 = vector.broadcast %cst_29 : f32 to vector<8x8xf32>
    %74 = arith.mulf %72, %73 : vector<8x8xf32>
    %75 = vector.broadcast %46 : vector<1x8xf32> to vector<8x8xf32>
    %76 = arith.addf %74, %75 : vector<8x8xf32>
    %cst_30 = arith.constant dense<0xFF800000> : vector<8xf32>
    %77 = vector.multi_reduction <maximumf>, %76, %cst_30 [1] : vector<8x8xf32> to vector<8xf32>
    %78 = vector.shape_cast %77 : vector<8xf32> to vector<8x1xf32>
    %79 = vector.broadcast %78 : vector<8x1xf32> to vector<8x8xf32>
    %80 = arith.subf %76, %79 : vector<8x8xf32>
    %81 = math.exp %80 : vector<8x8xf32>
    %cst_31 = arith.constant dense<0.000000e+00> : vector<8xf32>
    %82 = vector.multi_reduction <add>, %81, %cst_31 [1] : vector<8x8xf32> to vector<8xf32>
    %83 = vector.shape_cast %82 : vector<8xf32> to vector<8x1xf32>
    %84 = vector.broadcast %83 : vector<8x1xf32> to vector<8x8xf32>
    %85 = arith.divf %81, %84 : vector<8x8xf32>
    %cst_32 = arith.constant dense<0.000000e+00> : vector<8x8xf32>
    %86 = tpu.matmul %85, %71, %cst_32 {dimension_numbers = #tpu.dot_dimension_numbers<[1], [0], [0], [1], [0, 0, 1, 1], [], []>} : vector<8x8xf32>, vector<8x8xf32>, vector<8x8xf32> -> vector<8x8xf32>
    %87 = vector.extract_strided_slice %37 {offsets = [8, 0], sizes = [8, 32], strides = [1, 1]} : vector<32x32xf32> to vector<8x32xf32>
    %cst_33 = arith.constant dense<0.000000e+00> : vector<8x32xf32>
    %88 = tpu.matmul %86, %87, %cst_33 {dimension_numbers = #tpu.dot_dimension_numbers<[1], [0], [0], [1], [0, 0, 1, 1], [], []>} : vector<8x8xf32>, vector<8x32xf32>, vector<8x32xf32> -> vector<8x32xf32>
    %89 = arith.addf %68, %88 : vector<8x32xf32>
    %90 = vector.extract_strided_slice %34 {offsets = [0, 16], sizes = [8, 8], strides = [1, 1]} : vector<16x32xf32> to vector<8x8xf32>
    %91 = vector.extract_strided_slice %35 {offsets = [0, 16], sizes = [8, 8], strides = [1, 1]} : vector<16x32xf32> to vector<8x8xf32>
    %92 = vector.extract_strided_slice %36 {offsets = [0, 16], sizes = [8, 8], strides = [1, 1]} : vector<16x32xf32> to vector<8x8xf32>
    %cst_34 = arith.constant dense<0.000000e+00> : vector<8x8xf32>
    %93 = tpu.matmul %90, %91, %cst_34 {dimension_numbers = #tpu.dot_dimension_numbers<[1], [1], [0], [0], [0, 0, 1, 0], [], []>} : vector<8x8xf32>, vector<8x8xf32>, vector<8x8xf32> -> vector<8x8xf32>
    %cst_35 = arith.constant 0.353553385 : f32
    %94 = vector.broadcast %cst_35 : f32 to vector<8x8xf32>
    %95 = arith.mulf %93, %94 : vector<8x8xf32>
    %96 = vector.broadcast %46 : vector<1x8xf32> to vector<8x8xf32>
    %97 = arith.addf %95, %96 : vector<8x8xf32>
    %cst_36 = arith.constant dense<0xFF800000> : vector<8xf32>
    %98 = vector.multi_reduction <maximumf>, %97, %cst_36 [1] : vector<8x8xf32> to vector<8xf32>
    %99 = vector.shape_cast %98 : vector<8xf32> to vector<8x1xf32>
    %100 = vector.broadcast %99 : vector<8x1xf32> to vector<8x8xf32>
    %101 = arith.subf %97, %100 : vector<8x8xf32>
    %102 = math.exp %101 : vector<8x8xf32>
    %cst_37 = arith.constant dense<0.000000e+00> : vector<8xf32>
    %103 = vector.multi_reduction <add>, %102, %cst_37 [1] : vector<8x8xf32> to vector<8xf32>
    %104 = vector.shape_cast %103 : vector<8xf32> to vector<8x1xf32>
    %105 = vector.broadcast %104 : vector<8x1xf32> to vector<8x8xf32>
    %106 = arith.divf %102, %105 : vector<8x8xf32>
    %cst_38 = arith.constant dense<0.000000e+00> : vector<8x8xf32>
    %107 = tpu.matmul %106, %92, %cst_38 {dimension_numbers = #tpu.dot_dimension_numbers<[1], [0], [0], [1], [0, 0, 1, 1], [], []>} : vector<8x8xf32>, vector<8x8xf32>, vector<8x8xf32> -> vector<8x8xf32>
    %108 = vector.extract_strided_slice %37 {offsets = [16, 0], sizes = [8, 32], strides = [1, 1]} : vector<32x32xf32> to vector<8x32xf32>
    %cst_39 = arith.constant dense<0.000000e+00> : vector<8x32xf32>
    %109 = tpu.matmul %107, %108, %cst_39 {dimension_numbers = #tpu.dot_dimension_numbers<[1], [0], [0], [1], [0, 0, 1, 1], [], []>} : vector<8x8xf32>, vector<8x32xf32>, vector<8x32xf32> -> vector<8x32xf32>
    %110 = arith.addf %89, %109 : vector<8x32xf32>
    %111 = vector.extract_strided_slice %34 {offsets = [0, 24], sizes = [8, 8], strides = [1, 1]} : vector<16x32xf32> to vector<8x8xf32>
    %112 = vector.extract_strided_slice %35 {offsets = [0, 24], sizes = [8, 8], strides = [1, 1]} : vector<16x32xf32> to vector<8x8xf32>
    %113 = vector.extract_strided_slice %36 {offsets = [0, 24], sizes = [8, 8], strides = [1, 1]} : vector<16x32xf32> to vector<8x8xf32>
    %cst_40 = arith.constant dense<0.000000e+00> : vector<8x8xf32>
    %114 = tpu.matmul %111, %112, %cst_40 {dimension_numbers = #tpu.dot_dimension_numbers<[1], [1], [0], [0], [0, 0, 1, 0], [], []>} : vector<8x8xf32>, vector<8x8xf32>, vector<8x8xf32> -> vector<8x8xf32>
    %cst_41 = arith.constant 0.353553385 : f32
    %115 = vector.broadcast %cst_41 : f32 to vector<8x8xf32>
    %116 = arith.mulf %114, %115 : vector<8x8xf32>
    %117 = vector.broadcast %46 : vector<1x8xf32> to vector<8x8xf32>
    %118 = arith.addf %116, %117 : vector<8x8xf32>
    %cst_42 = arith.constant dense<0xFF800000> : vector<8xf32>
    %119 = vector.multi_reduction <maximumf>, %118, %cst_42 [1] : vector<8x8xf32> to vector<8xf32>
    %120 = vector.shape_cast %119 : vector<8xf32> to vector<8x1xf32>
    %121 = vector.broadcast %120 : vector<8x1xf32> to vector<8x8xf32>
    %122 = arith.subf %118, %121 : vector<8x8xf32>
    %123 = math.exp %122 : vector<8x8xf32>
    %cst_43 = arith.constant dense<0.000000e+00> : vector<8xf32>
    %124 = vector.multi_reduction <add>, %123, %cst_43 [1] : vector<8x8xf32> to vector<8xf32>
    %125 = vector.shape_cast %124 : vector<8xf32> to vector<8x1xf32>
    %126 = vector.broadcast %125 : vector<8x1xf32> to vector<8x8xf32>
    %127 = arith.divf %123, %126 : vector<8x8xf32>
    %cst_44 = arith.constant dense<0.000000e+00> : vector<8x8xf32>
    %128 = tpu.matmul %127, %113, %cst_44 {dimension_numbers = #tpu.dot_dimension_numbers<[1], [0], [0], [1], [0, 0, 1, 1], [], []>} : vector<8x8xf32>, vector<8x8xf32>, vector<8x8xf32> -> vector<8x8xf32>
    %129 = vector.extract_strided_slice %37 {offsets = [24, 0], sizes = [8, 32], strides = [1, 1]} : vector<32x32xf32> to vector<8x32xf32>
    %cst_45 = arith.constant dense<0.000000e+00> : vector<8x32xf32>
    %130 = tpu.matmul %128, %129, %cst_45 {dimension_numbers = #tpu.dot_dimension_numbers<[1], [0], [0], [1], [0, 0, 1, 1], [], []>} : vector<8x8xf32>, vector<8x32xf32>, vector<8x32xf32> -> vector<8x32xf32>
    %131 = arith.addf %110, %130 : vector<8x32xf32>
    %132 = vector.extract_strided_slice %0 {offsets = [0, 0], sizes = [8, 32], strides = [1, 1]} : vector<16x32xf32> to vector<8x32xf32>
    %133 = arith.addf %132, %131 : vector<8x32xf32>
    %134 = vector.broadcast %3 : vector<1x32xf32> to vector<8x32xf32>
    %135 = arith.addf %133, %134 : vector<8x32xf32>
    %cst_46 = arith.constant dense<0.000000e+00> : vector<8xf32>
    %136 = vector.multi_reduction <add>, %135, %cst_46 [1] : vector<8x32xf32> to vector<8xf32>
    %137 = vector.shape_cast %136 : vector<8xf32> to vector<8x1xf32>
    %cst_47 = arith.constant 3.200000e+01 : f32
    %138 = vector.broadcast %cst_47 : f32 to vector<8x1xf32>
    %139 = arith.divf %137, %138 : vector<8x1xf32>
    %140 = vector.broadcast %139 : vector<8x1xf32> to vector<8x32xf32>
    %141 = arith.subf %135, %140 : vector<8x32xf32>
    %142 = arith.mulf %141, %141 : vector<8x32xf32>
    %cst_48 = arith.constant dense<0.000000e+00> : vector<8xf32>
    %143 = vector.multi_reduction <add>, %142, %cst_48 [1] : vector<8x32xf32> to vector<8xf32>
    %144 = vector.shape_cast %143 : vector<8xf32> to vector<8x1xf32>
    %cst_49 = arith.constant 0.0322580636 : f32
    %145 = vector.broadcast %cst_49 : f32 to vector<8x1xf32>
    %146 = arith.mulf %144, %145 : vector<8x1xf32>
    %147 = math.sqrt %146 : vector<8x1xf32>
    %148 = vector.broadcast %6 : vector<1x32xf32> to vector<8x32xf32>
    %149 = arith.mulf %148, %141 : vector<8x32xf32>
    %cst_50 = arith.constant 9.99999997E-7 : f32
    %150 = vector.broadcast %cst_50 : f32 to vector<8x1xf32>
    %151 = arith.addf %147, %150 : vector<8x1xf32>
    %152 = vector.broadcast %151 : vector<8x1xf32> to vector<8x32xf32>
    %153 = arith.divf %149, %152 : vector<8x32xf32>
    %154 = vector.broadcast %7 : vector<1x32xf32> to vector<8x32xf32>
    %155 = arith.addf %153, %154 : vector<8x32xf32>
    %cst_51 = arith.constant dense<0.000000e+00> : vector<8x64xf32>
    %156 = tpu.matmul %155, %38, %cst_51 {dimension_numbers = #tpu.dot_dimension_numbers<[1], [0], [0], [1], [0, 0, 1, 1], [], []>} : vector<8x32xf32>, vector<32x64xf32>, vector<8x64xf32> -> vector<8x64xf32>
    %157 = vector.broadcast %8 : vector<1x64xf32> to vector<8x64xf32>
    %158 = arith.addf %156, %157 : vector<8x64xf32>
    %cst_52 = arith.constant 0.000000e+00 : f32
    %159 = vector.broadcast %cst_52 : f32 to vector<8x64xf32>
    %160 = arith.maximumf %158, %159 : vector<8x64xf32>
    %cst_53 = arith.constant dense<0.000000e+00> : vector<8x32xf32>
    %161 = tpu.matmul %160, %39, %cst_53 {dimension_numbers = #tpu.dot_dimension_numbers<[1], [0], [0], [1], [0, 0, 1, 1], [], []>} : vector<8x64xf32>, vector<64x32xf32>, vector<8x32xf32> -> vector<8x32xf32>
    %162 = vector.broadcast %9 : vector<1x32xf32> to vector<8x32xf32>
    %163 = arith.addf %161, %162 : vector<8x32xf32>
    %164 = arith.addf %135, %163 : vector<8x32xf32>
    %c0_54 = arith.constant 0 : index
    %c0_55 = arith.constant 0 : index
    %165 = vector.load %arg7[%c0_54, %c0_55] : memref<16x32xf32, #tpu.memory_space<vmem>>, vector<8x32xf32>
    tpu.vector_store %arg7[%c0_54, %c0_55], %164 {strides = array<i32>} : memref<16x32xf32, #tpu.memory_space<vmem>>, vector<8x32xf32>,
    %166 = vector.extract_strided_slice %45 {offsets = [1, 0], sizes = [1, 8], strides = [1, 1]} : vector<2x8xf32> to vector<1x8xf32>
    %cst_56 = arith.constant 0.000000e+00 : f32
    %167 = vector.broadcast %cst_56 : f32 to vector<8x32xf32>
    %168 = vector.extract_strided_slice %34 {offsets = [8, 0], sizes = [8, 8], strides = [1, 1]} : vector<16x32xf32> to vector<8x8xf32>
    %169 = vector.extract_strided_slice %35 {offsets = [8, 0], sizes = [8, 8], strides = [1, 1]} : vector<16x32xf32> to vector<8x8xf32>
    %170 = vector.extract_strided_slice %36 {offsets = [8, 0], sizes = [8, 8], strides = [1, 1]} : vector<16x32xf32> to vector<8x8xf32>
    %cst_57 = arith.constant dense<0.000000e+00> : vector<8x8xf32>
    %171 = tpu.matmul %168, %169, %cst_57 {dimension_numbers = #tpu.dot_dimension_numbers<[1], [1], [0], [0], [0, 0, 1, 0], [], []>} : vector<8x8xf32>, vector<8x8xf32>, vector<8x8xf32> -> vector<8x8xf32>
    %cst_58 = arith.constant 0.353553385 : f32
    %172 = vector.broadcast %cst_58 : f32 to vector<8x8xf32>
    %173 = arith.mulf %171, %172 : vector<8x8xf32>
    %174 = vector.broadcast %166 : vector<1x8xf32> to vector<8x8xf32>
    %175 = arith.addf %173, %174 : vector<8x8xf32>
    %cst_59 = arith.constant dense<0xFF800000> : vector<8xf32>
    %176 = vector.multi_reduction <maximumf>, %175, %cst_59 [1] : vector<8x8xf32> to vector<8xf32>
    %177 = vector.shape_cast %176 : vector<8xf32> to vector<8x1xf32>
    %178 = vector.broadcast %177 : vector<8x1xf32> to vector<8x8xf32>
    %179 = arith.subf %175, %178 : vector<8x8xf32>
    %180 = math.exp %179 : vector<8x8xf32>
    %cst_60 = arith.constant dense<0.000000e+00> : vector<8xf32>
    %181 = vector.multi_reduction <add>, %180, %cst_60 [1] : vector<8x8xf32> to vector<8xf32>
    %182 = vector.shape_cast %181 : vector<8xf32> to vector<8x1xf32>
    %183 = vector.broadcast %182 : vector<8x1xf32> to vector<8x8xf32>
    %184 = arith.divf %180, %183 : vector<8x8xf32>
    %cst_61 = arith.constant dense<0.000000e+00> : vector<8x8xf32>
    %185 = tpu.matmul %184, %170, %cst_61 {dimension_numbers = #tpu.dot_dimension_numbers<[1], [0], [0], [1], [0, 0, 1, 1], [], []>} : vector<8x8xf32>, vector<8x8xf32>, vector<8x8xf32> -> vector<8x8xf32>
    %186 = vector.extract_strided_slice %37 {offsets = [0, 0], sizes = [8, 32], strides = [1, 1]} : vector<32x32xf32> to vector<8x32xf32>
    %cst_62 = arith.constant dense<0.000000e+00> : vector<8x32xf32>
    %187 = tpu.matmul %185, %186, %cst_62 {dimension_numbers = #tpu.dot_dimension_numbers<[1], [0], [0], [1], [0, 0, 1, 1], [], []>} : vector<8x8xf32>, vector<8x32xf32>, vector<8x32xf32> -> vector<8x32xf32>
    %188 = arith.addf %167, %187 : vector<8x32xf32>
    %189 = vector.extract_strided_slice %34 {offsets = [8, 8], sizes = [8, 8], strides = [1, 1]} : vector<16x32xf32> to vector<8x8xf32>
    %190 = vector.extract_strided_slice %35 {offsets = [8, 8], sizes = [8, 8], strides = [1, 1]} : vector<16x32xf32> to vector<8x8xf32>
    %191 = vector.extract_strided_slice %36 {offsets = [8, 8], sizes = [8, 8], strides = [1, 1]} : vector<16x32xf32> to vector<8x8xf32>
    %cst_63 = arith.constant dense<0.000000e+00> : vector<8x8xf32>
    %192 = tpu.matmul %189, %190, %cst_63 {dimension_numbers = #tpu.dot_dimension_numbers<[1], [1], [0], [0], [0, 0, 1, 0], [], []>} : vector<8x8xf32>, vector<8x8xf32>, vector<8x8xf32> -> vector<8x8xf32>
    %cst_64 = arith.constant 0.353553385 : f32
    %193 = vector.broadcast %cst_64 : f32 to vector<8x8xf32>
    %194 = arith.mulf %192, %193 : vector<8x8xf32>
    %195 = vector.broadcast %166 : vector<1x8xf32> to vector<8x8xf32>
    %196 = arith.addf %194, %195 : vector<8x8xf32>
    %cst_65 = arith.constant dense<0xFF800000> : vector<8xf32>
    %197 = vector.multi_reduction <maximumf>, %196, %cst_65 [1] : vector<8x8xf32> to vector<8xf32>
    %198 = vector.shape_cast %197 : vector<8xf32> to vector<8x1xf32>
    %199 = vector.broadcast %198 : vector<8x1xf32> to vector<8x8xf32>
    %200 = arith.subf %196, %199 : vector<8x8xf32>
    %201 = math.exp %200 : vector<8x8xf32>
    %cst_66 = arith.constant dense<0.000000e+00> : vector<8xf32>
    %202 = vector.multi_reduction <add>, %201, %cst_66 [1] : vector<8x8xf32> to vector<8xf32>
    %203 = vector.shape_cast %202 : vector<8xf32> to vector<8x1xf32>
    %204 = vector.broadcast %203 : vector<8x1xf32> to vector<8x8xf32>
    %205 = arith.divf %201, %204 : vector<8x8xf32>
    %cst_67 = arith.constant dense<0.000000e+00> : vector<8x8xf32>
    %206 = tpu.matmul %205, %191, %cst_67 {dimension_numbers = #tpu.dot_dimension_numbers<[1], [0], [0], [1], [0, 0, 1, 1], [], []>} : vector<8x8xf32>, vector<8x8xf32>, vector<8x8xf32> -> vector<8x8xf32>
    %207 = vector.extract_strided_slice %37 {offsets = [8, 0], sizes = [8, 32], strides = [1, 1]} : vector<32x32xf32> to vector<8x32xf32>
    %cst_68 = arith.constant dense<0.000000e+00> : vector<8x32xf32>
    %208 = tpu.matmul %206, %207, %cst_68 {dimension_numbers = #tpu.dot_dimension_numbers<[1], [0], [0], [1], [0, 0, 1, 1], [], []>} : vector<8x8xf32>, vector<8x32xf32>, vector<8x32xf32> -> vector<8x32xf32>
    %209 = arith.addf %188, %208 : vector<8x32xf32>
    %210 = vector.extract_strided_slice %34 {offsets = [8, 16], sizes = [8, 8], strides = [1, 1]} : vector<16x32xf32> to vector<8x8xf32>
    %211 = vector.extract_strided_slice %35 {offsets = [8, 16], sizes = [8, 8], strides = [1, 1]} : vector<16x32xf32> to vector<8x8xf32>
    %212 = vector.extract_strided_slice %36 {offsets = [8, 16], sizes = [8, 8], strides = [1, 1]} : vector<16x32xf32> to vector<8x8xf32>
    %cst_69 = arith.constant dense<0.000000e+00> : vector<8x8xf32>
    %213 = tpu.matmul %210, %211, %cst_69 {dimension_numbers = #tpu.dot_dimension_numbers<[1], [1], [0], [0], [0, 0, 1, 0], [], []>} : vector<8x8xf32>, vector<8x8xf32>, vector<8x8xf32> -> vector<8x8xf32>
    %cst_70 = arith.constant 0.353553385 : f32
    %214 = vector.broadcast %cst_70 : f32 to vector<8x8xf32>
    %215 = arith.mulf %213, %214 : vector<8x8xf32>
    %216 = vector.broadcast %166 : vector<1x8xf32> to vector<8x8xf32>
    %217 = arith.addf %215, %216 : vector<8x8xf32>
    %cst_71 = arith.constant dense<0xFF800000> : vector<8xf32>
    %218 = vector.multi_reduction <maximumf>, %217, %cst_71 [1] : vector<8x8xf32> to vector<8xf32>
    %219 = vector.shape_cast %218 : vector<8xf32> to vector<8x1xf32>
    %220 = vector.broadcast %219 : vector<8x1xf32> to vector<8x8xf32>
    %221 = arith.subf %217, %220 : vector<8x8xf32>
    %222 = math.exp %221 : vector<8x8xf32>
    %cst_72 = arith.constant dense<0.000000e+00> : vector<8xf32>
    %223 = vector.multi_reduction <add>, %222, %cst_72 [1] : vector<8x8xf32> to vector<8xf32>
    %224 = vector.shape_cast %223 : vector<8xf32> to vector<8x1xf32>
    %225 = vector.broadcast %224 : vector<8x1xf32> to vector<8x8xf32>
    %226 = arith.divf %222, %225 : vector<8x8xf32>
    %cst_73 = arith.constant dense<0.000000e+00> : vector<8x8xf32>
    %227 = tpu.matmul %226, %212, %cst_73 {dimension_numbers = #tpu.dot_dimension_numbers<[1], [0], [0], [1], [0, 0, 1, 1], [], []>} : vector<8x8xf32>, vector<8x8xf32>, vector<8x8xf32> -> vector<8x8xf32>
    %228 = vector.extract_strided_slice %37 {offsets = [16, 0], sizes = [8, 32], strides = [1, 1]} : vector<32x32xf32> to vector<8x32xf32>
    %cst_74 = arith.constant dense<0.000000e+00> : vector<8x32xf32>
    %229 = tpu.matmul %227, %228, %cst_74 {dimension_numbers = #tpu.dot_dimension_numbers<[1], [0], [0], [1], [0, 0, 1, 1], [], []>} : vector<8x8xf32>, vector<8x32xf32>, vector<8x32xf32> -> vector<8x32xf32>
    %230 = arith.addf %209, %229 : vector<8x32xf32>
    %231 = vector.extract_strided_slice %34 {offsets = [8, 24], sizes = [8, 8], strides = [1, 1]} : vector<16x32xf32> to vector<8x8xf32>
    %232 = vector.extract_strided_slice %35 {offsets = [8, 24], sizes = [8, 8], strides = [1, 1]} : vector<16x32xf32> to vector<8x8xf32>
    %233 = vector.extract_strided_slice %36 {offsets = [8, 24], sizes = [8, 8], strides = [1, 1]} : vector<16x32xf32> to vector<8x8xf32>
    %cst_75 = arith.constant dense<0.000000e+00> : vector<8x8xf32>
    %234 = tpu.matmul %231, %232, %cst_75 {dimension_numbers = #tpu.dot_dimension_numbers<[1], [1], [0], [0], [0, 0, 1, 0], [], []>} : vector<8x8xf32>, vector<8x8xf32>, vector<8x8xf32> -> vector<8x8xf32>
    %cst_76 = arith.constant 0.353553385 : f32
    %235 = vector.broadcast %cst_76 : f32 to vector<8x8xf32>
    %236 = arith.mulf %234, %235 : vector<8x8xf32>
    %237 = vector.broadcast %166 : vector<1x8xf32> to vector<8x8xf32>
    %238 = arith.addf %236, %237 : vector<8x8xf32>
    %cst_77 = arith.constant dense<0xFF800000> : vector<8xf32>
    %239 = vector.multi_reduction <maximumf>, %238, %cst_77 [1] : vector<8x8xf32> to vector<8xf32>
    %240 = vector.shape_cast %239 : vector<8xf32> to vector<8x1xf32>
    %241 = vector.broadcast %240 : vector<8x1xf32> to vector<8x8xf32>
    %242 = arith.subf %238, %241 : vector<8x8xf32>
    %243 = math.exp %242 : vector<8x8xf32>
    %cst_78 = arith.constant dense<0.000000e+00> : vector<8xf32>
    %244 = vector.multi_reduction <add>, %243, %cst_78 [1] : vector<8x8xf32> to vector<8xf32>
    %245 = vector.shape_cast %244 : vector<8xf32> to vector<8x1xf32>
    %246 = vector.broadcast %245 : vector<8x1xf32> to vector<8x8xf32>
    %247 = arith.divf %243, %246 : vector<8x8xf32>
    %cst_79 = arith.constant dense<0.000000e+00> : vector<8x8xf32>
    %248 = tpu.matmul %247, %233, %cst_79 {dimension_numbers = #tpu.dot_dimension_numbers<[1], [0], [0], [1], [0, 0, 1, 1], [], []>} : vector<8x8xf32>, vector<8x8xf32>, vector<8x8xf32> -> vector<8x8xf32>
    %249 = vector.extract_strided_slice %37 {offsets = [24, 0], sizes = [8, 32], strides = [1, 1]} : vector<32x32xf32> to vector<8x32xf32>
    %cst_80 = arith.constant dense<0.000000e+00> : vector<8x32xf32>
    %250 = tpu.matmul %248, %249, %cst_80 {dimension_numbers = #tpu.dot_dimension_numbers<[1], [0], [0], [1], [0, 0, 1, 1], [], []>} : vector<8x8xf32>, vector<8x32xf32>, vector<8x32xf32> -> vector<8x32xf32>
    %251 = arith.addf %230, %250 : vector<8x32xf32>
    %252 = vector.extract_strided_slice %0 {offsets = [8, 0], sizes = [8, 32], strides = [1, 1]} : vector<16x32xf32> to vector<8x32xf32>
    %253 = arith.addf %252, %251 : vector<8x32xf32>
    %254 = vector.broadcast %3 : vector<1x32xf32> to vector<8x32xf32>
    %255 = arith.addf %253, %254 : vector<8x32xf32>
    %cst_81 = arith.constant dense<0.000000e+00> : vector<8xf32>
    %256 = vector.multi_reduction <add>, %255, %cst_81 [1] : vector<8x32xf32> to vector<8xf32>
    %257 = vector.shape_cast %256 : vector<8xf32> to vector<8x1xf32>
    %cst_82 = arith.constant 3.200000e+01 : f32
    %258 = vector.broadcast %cst_82 : f32 to vector<8x1xf32>
    %259 = arith.divf %257, %258 : vector<8x1xf32>
    %260 = vector.broadcast %259 : vector<8x1xf32> to vector<8x32xf32>
    %261 = arith.subf %255, %260 : vector<8x32xf32>
    %262 = arith.mulf %261, %261 : vector<8x32xf32>
    %cst_83 = arith.constant dense<0.000000e+00> : vector<8xf32>
    %263 = vector.multi_reduction <add>, %262, %cst_83 [1] : vector<8x32xf32> to vector<8xf32>
    %264 = vector.shape_cast %263 : vector<8xf32> to vector<8x1xf32>
    %cst_84 = arith.constant 0.0322580636 : f32
    %265 = vector.broadcast %cst_84 : f32 to vector<8x1xf32>
    %266 = arith.mulf %264, %265 : vector<8x1xf32>
    %267 = math.sqrt %266 : vector<8x1xf32>
    %268 = vector.broadcast %6 : vector<1x32xf32> to vector<8x32xf32>
    %269 = arith.mulf %268, %261 : vector<8x32xf32>
    %cst_85 = arith.constant 9.99999997E-7 : f32
    %270 = vector.broadcast %cst_85 : f32 to vector<8x1xf32>
    %271 = arith.addf %267, %270 : vector<8x1xf32>
    %272 = vector.broadcast %271 : vector<8x1xf32> to vector<8x32xf32>
    %273 = arith.divf %269, %272 : vector<8x32xf32>
    %274 = vector.broadcast %7 : vector<1x32xf32> to vector<8x32xf32>
    %275 = arith.addf %273, %274 : vector<8x32xf32>
    %cst_86 = arith.constant dense<0.000000e+00> : vector<8x64xf32>
    %276 = tpu.matmul %275, %38, %cst_86 {dimension_numbers = #tpu.dot_dimension_numbers<[1], [0], [0], [1], [0, 0, 1, 1], [], []>} : vector<8x32xf32>, vector<32x64xf32>, vector<8x64xf32> -> vector<8x64xf32>
    %277 = vector.broadcast %8 : vector<1x64xf32> to vector<8x64xf32>
    %278 = arith.addf %276, %277 : vector<8x64xf32>
    %cst_87 = arith.constant 0.000000e+00 : f32
    %279 = vector.broadcast %cst_87 : f32 to vector<8x64xf32>
    %280 = arith.maximumf %278, %279 : vector<8x64xf32>
    %cst_88 = arith.constant dense<0.000000e+00> : vector<8x32xf32>
    %281 = tpu.matmul %280, %39, %cst_88 {dimension_numbers = #tpu.dot_dimension_numbers<[1], [0], [0], [1], [0, 0, 1, 1], [], []>} : vector<8x64xf32>, vector<64x32xf32>, vector<8x32xf32> -> vector<8x32xf32>
    %282 = vector.broadcast %9 : vector<1x32xf32> to vector<8x32xf32>
    %283 = arith.addf %281, %282 : vector<8x32xf32>
    %284 = arith.addf %255, %283 : vector<8x32xf32>
    %c8 = arith.constant 8 : index
    %c0_89 = arith.constant 0 : index
    %285 = vector.load %arg7[%c8, %c0_89] : memref<16x32xf32, #tpu.memory_space<vmem>>, vector<8x32xf32>
    tpu.vector_store %arg7[%c8, %c0_89], %284 {strides = array<i32>} : memref<16x32xf32, #tpu.memory_space<vmem>>, vector<8x32xf32>,
    return
  }
}

</mosaic_0001>

<bundles_post_ra>
// kernel: encoder_layer.1
= control target key start
LH: loop header
LB: loop body
LE: loop exit
PB: predicated region body
PF: predicated region fallthrough
CT: control target
= control target key end

     0   :  { %12 = vsyncpa [#allocation3], 0  ;;  %s1860_s0 = inlined_call_operand.hbm [shape: f32[2,8], index: 0, kind: input, shape index: {}]   ;;  %s1861_s1 = inlined_call_operand.hbm [shape: f32[16,32], index: 1, kind: input, shape index: {}]   ;;  %s1862_s2 = inlined_call_operand.vmem [shape: f32[32,96], index: 2, kind: input, shape index: {}]   ;;  %s1863_s3 = inlined_call_operand.vmem [shape: f32[32,32], index: 3, kind: input, shape index: {}]   ;;  %s1864_s4 = inlined_call_operand.vmem [shape: f32[32,64], index: 4, kind: input, shape index: {}]   ;;  %s1865_s5 = inlined_call_operand.vmem [shape: f32[64,32], index: 5, kind: input, shape index: {}]   ;;  %s1866_s6 = inlined_call_operand.hbm [shape: f32[8,96], index: 6, kind: input, shape index: {}]   ;;  %s1867_s7 = inlined_call_operand.hbm [shape: f32[16,32], index: 7, kind: output, shape index: {}]  }
   0x1   :  { %13 = vsyncpa [#allocation6], 0  ;;  %s30_s26 = sshll.u32 %s1861_s1, 4  ;;  %s31_s26 = int_to_ptr.hbm [resolvable:$true] %s30_s26 }
   0x2   :  { %14 = vsyncpa [#allocation4], 0  ;;  %s1463_s27 = smov [#allocation5]   ;;  %s20_s8 = sshll.u32 %s1860_s0, 4  ;;  %s21_s8 = int_to_ptr.hbm [resolvable:$true] %s20_s8 }
   0x3   :  { %s32_s28 = sshll.u32 %s1463_s27, 4  ;;  %s1464_s9 = smov 128   ;;  %s33_s28 = int_to_ptr.vmem [resolvable:$true] %s32_s28 }
   0x4   :  { %s1465_s10 = smov 8   ;;  %s1466_s11 = smov [#allocation2]  }
   0x5   :  { %38 = dma.hbm_to_vmem [thread:$0]  %s31_s26, 256, %s33_s28, [#allocation6], %s1464_s9, %s1464_s9, %s1465_s10  }
   0x6   :  { %s22_s12 = sshll.u32 %s1466_s11, 4  ;;  %s52_s14 = sshll.u32 %s1866_s6, 4  ;;  %s23_s12 = int_to_ptr.vmem [resolvable:$true] %s22_s12  ;;  %s53_s14 = int_to_ptr.hbm [resolvable:$true] %s52_s14 }
   0x7   :  { %25 = dma.hbm_to_vmem [thread:$0]  %s21_s8, 32, %s23_s12, [#allocation3]  }
   0x8   :  { %s1467_s15 = smov [#allocation7]  }
   0x9   :  { %s54_s16 = sshll.u32 %s1467_s15, 4  ;;  %s55_s16 = int_to_ptr.vmem [resolvable:$true] %s54_s16 }
   0xa   :  { %57 = dma.hbm_to_vmem [thread:$0]  %s53_s14, 128, %s55_s16, [#allocation6]  }
   0xb   :  { %1457 = dma.done.wait [#allocation3], 32  }
   0xc   :  { %1458 = vsyncadd [#allocation3], 4294967264 }
   0xd   :  { %1459 = dma.done.wait [#allocation6], 384  }
   0xe   :  { %1460 = vsyncadd [#allocation6], 4294966912  ;;  %vm73_vm0 = vcmask 261120   ;;  %v1534_v0 = vld [vmem:[#allocation5] sm:$0xff]  ;;  %v71_v1 = vld [vmem:[#allocation5 + $0x8] sm:$0xff]  ;;  %v1468_v4 = vmov 32.0  }
   0xf   :  { %v74_v2 = vsel %vm73_vm0, %v1534_v0, 0.0  ;;  %v77_v3 = vsel %vm73_vm0, %v71_v1, 0.0  ;;  %1310 = vrcp.f32 %v1468_v4  ;;  %v166_v21 = vld [vmem:[%s1862_s2 + $0x18] sm:$0xff]  ;;  %v165_v22 = vld [vmem:[%s1862_s2 + $0x10] sm:$0xff]  ;;  %v164_v23 = vld [vmem:[%s1862_s2 + $0x8] sm:$0xff]  ;;  %s1470_s23 = smov 96  }
  0x10   :  { %75 = vadd.xlane.f32.xlu0 %v74_v2  ;;  %78 = vadd.xlane.f32.xlu1 %v77_v3  ;;  %v163_v24 = vld [vmem:[%s1862_s2] sm:$0xff]  ;;  %v1562_v46 = vld [vmem:[#allocation7] sm:$0xff]  ;;  %s1469_s2 = smov 120   ;;  %s1471_s24 = smov 64   ;;  %vm219_vm14 = vcmask 64512  }
  0x11   :  { %186 = vmatpush.msra.mxu0 %v166_v21  ;;  %v125_v52 = vperm.slane %v1562_v46, 2  ;;  %v160_v63 = vperm.slane %v1562_v46, 3  ;;  %s1472_s25 = smov 88   ;;  %s1473_s26 = smov 80  }
  0x12   :  { %s1474_s27 = smov 112   ;;  %s1475_s28 = smov 104  }
  0x13   :  { %187 = vmatpush.msra.mxu0 %v165_v22  ;;  %s1477_s29 = smov 72   ;;  %s1478_s30 = smov 56  }
  0x14   :  { %s1479_s8 = smov 48   ;;  %s1480_s14 = smov 40  }
  0x15   :  { %v1311_v5 = vpop.eup %1310  ;;  %188 = vmatpush.msra.mxu0 %v164_v23 }
  0x16   :  { %v81_v6 = vmul.f32 32.0, %v1311_v5  ;;  %vm85_vm1 = vweird.f32 %v1311_v5 }
  0x17   :  { %189 = vmatpush.msra.mxu0 %v163_v24 }
  0x18   :  { %v82_v7 = vsub.f32 1.0, %v81_v6 }
  0x1a   :  { %v83_v8 = vmul.f32 %v1311_v5, %v82_v7 }
  0x1c   :  { %v84_v9 = vadd.f32 %v1311_v5, %v83_v8 }
  0x1e   :  { %v1539_v10 = vsel %vm85_vm1, %v1311_v5, %v84_v9 }
  0x83   :  { %v76_v11 = vpop.xlane.xlu0 %75  ;;  %v79_v12 = vpop.xlane.xlu1 %78 }
  0x84   :  { %v87_v13 = vmul.f32 %v1539_v10, %v76_v11  ;;  %v88_v14 = vmul.f32 %v1539_v10, %v79_v12 }
  0x86   :  { %v89_v15 = vsub.f32 %v1534_v0, %v87_v13  ;;  %v1544_v16 = vsub.f32 %v71_v1, %v88_v14 }
  0x88   :  { %v91_v17 = vmul.f32 %v89_v15, %v89_v15  ;;  %v92_v18 = vmul.f32 %v1544_v16, %v1544_v16  ;;  %v126_v60 = vmul.f32 %v125_v52, %v89_v15  ;;  %v127_v12 = vmul.f32 %v125_v52, %v1544_v16 }
  0x8a   :  { %v93_v19 = vsel %vm73_vm0, %v91_v17, 0.0  ;;  %v96_v20 = vsel %vm73_vm0, %v92_v18, 0.0 }
  0x8b   :  { %94 = vadd.xlane.f32.xlu0 %v93_v19  ;;  %97 = vadd.xlane.f32.xlu1 %v96_v20  ;;  %v167_v19 = vperm.slane %v1562_v46, 0 }
  0xfe   :  { %v95_v25 = vpop.xlane.xlu0 %94  ;;  %v98_v31 = vpop.xlane.xlu1 %97 }
  0xff   :  { %v99_v26 = vmul.f32 0.032258064, %v95_v25  ;;  %v100_v33 = vmul.f32 0.032258064, %v98_v31  ;;  %v213_v25 = vld [vmem:[#allocation2] sm:$0x3] }
 0x100   :  { %vm214_vm15 = vcmp.eq.f32.partialorder %v213_v25, 0.0 }
 0x101   :  { %1312 = vrsqrt.f32 %v99_v26  ;;  %vm108_vm2 = vcmp.eq.f32.partialorder %v99_v26, inf  ;;  %v111_v36 = vand.u32 2147483648, %v99_v26  ;;  %vm110_vm3 = vcmp.eq.f32.partialorder %v99_v26, 0.0 }
 0x102   :  { %1314 = vrsqrt.f32 %v100_v33  ;;  %vm120_vm4 = vcmp.eq.f32.partialorder %v100_v33, inf  ;;  %v123_v49 = vand.u32 2147483648, %v100_v33  ;;  %vm122_vm5 = vcmp.eq.f32.partialorder %v100_v33, 0.0 }
 0x107   :  { %v1313_v27 = vpop.eup %1312 }
 0x108   :  { %v102_v28 = vmul.f32 %v1313_v27, %v99_v26  ;;  %v1315_v39 = vpop.eup %1314 }
 0x109   :  { %v114_v41 = vmul.f32 %v1315_v39, %v100_v33 }
 0x10a   :  { %v103_v29 = vmul.f32 %v1313_v27, %v102_v28 }
 0x10b   :  { %v115_v42 = vmul.f32 %v1315_v39, %v114_v41 }
 0x10c   :  { %v104_v30 = vmul.f32 0.5, %v103_v29 }
 0x10d   :  { %v116_v43 = vmul.f32 0.5, %v115_v42 }
 0x10e   :  { %v105_v32 = vsub.f32 1.5, %v104_v30 }
 0x10f   :  { %v117_v44 = vsub.f32 1.5, %v116_v43 }
 0x110   :  { %v106_v34 = vmul.f32 %v1313_v27, %v105_v32 }
 0x111   :  { %v118_v48 = vmul.f32 %v1315_v39, %v117_v44 }
 0x112   :  { %v107_v35 = vmul.f32 %v106_v34, %v99_v26 }
 0x113   :  { %v119_v51 = vmul.f32 %v118_v48, %v100_v33 }
 0x114   :  { %v109_v37 = vsel %vm108_vm2, %v99_v26, %v107_v35  ;;  %v1476_v26 = vmov 0.0  }
 0x115   :  { %v112_v38 = vsel %vm110_vm3, %v111_v36, %v109_v37  ;;  %v121_v56 = vsel %vm120_vm4, %v100_v33, %v119_v51  ;;  %v1593_v27 = vsel %vm214_vm15, -1e+09, %v1476_v26 }
 0x116   :  { %v128_v40 = vadd.f32 1e-06, %v112_v38  ;;  %v124_v57 = vsel %vm122_vm5, %v123_v49, %v121_v56  ;;  %v1596_v28 = vperm.slane %v1593_v27, 0 }
 0x117   :  { %v129_v59 = vadd.f32 1e-06, %v124_v57 }
 0x118   :  { %1316 = vrcp.f32 %v128_v40  ;;  %v141_v53 = vand.u32 2147483648, %v128_v40  ;;  %v139_v55 = vand.u32 2147483647, %v128_v40  ;;  %vm135_vm7 = vweird.f32 %v128_v40 }
 0x119   :  { %1318 = vrcp.f32 %v129_v59  ;;  %v156_v6 = vand.u32 2147483648, %v129_v59  ;;  %vm150_vm10 = vweird.f32 %v129_v59  ;;  %v154_v8 = vand.u32 2147483647, %v129_v59 }
 0x11a   :  { %v142_v61 = vor.u32 1.1754944e-38, %v141_v53  ;;  %vm140_vm9 = vcmp.eq.f32.partialorder %v139_v55, 8.507059e+37 }
 0x11b   :  { %v157_v11 = vor.u32 1.1754944e-38, %v156_v6  ;;  %vm155_vm13 = vcmp.eq.f32.partialorder %v154_v8, 8.507059e+37 }
 0x11e   :  { %v1317_v45 = vpop.eup %1316 }
 0x11f   :  { %v131_v47 = vmul.f32 %v1317_v45, %v128_v40  ;;  %vm136_vm6 = vweird.f32 %v1317_v45  ;;  %v1319_v4 = vpop.eup %1318 }
 0x120   :  { %vm137_vm8 = vmor %vm135_vm7, %vm136_vm6  ;;  %v146_v5 = vmul.f32 %v1319_v4, %v129_v59  ;;  %vm151_vm11 = vweird.f32 %v1319_v4 }
 0x121   :  { %v132_v50 = vsub.f32 1.0, %v131_v47  ;;  %vm152_vm12 = vmor %vm150_vm10, %vm151_vm11 }
 0x122   :  { %v147_v7 = vsub.f32 1.0, %v146_v5 }
 0x123   :  { %v133_v54 = vmul.f32 %v1317_v45, %v132_v50 }
 0x124   :  { %v148_v9 = vmul.f32 %v1319_v4, %v147_v7 }
 0x125   :  { %v134_v58 = vadd.f32 %v1317_v45, %v133_v54 }
 0x126   :  { %v149_v13 = vadd.f32 %v1319_v4, %v148_v9 }
 0x127   :  { %v138_v62 = vsel %vm137_vm8, %v1317_v45, %v134_v58 }
 0x128   :  { %v143_v1 = vsel %vm140_vm9, %v142_v61, %v138_v62  ;;  %v153_v14 = vsel %vm152_vm12, %v1319_v4, %v149_v13 }
 0x129   :  { %v144_v2 = vmul.f32 %v143_v1, %v126_v60  ;;  %v158_v15 = vsel %vm155_vm13, %v157_v11, %v153_v14 }
 0x12a   :  { %v159_v17 = vmul.f32 %v158_v15, %v127_v12 }
 0x12b   :  { %v161_v3 = vadd.f32 %v160_v63, %v144_v2 }
 0x12c   :  { %v162_v18 = vadd.f32 %v160_v63, %v159_v17 }
 0x12d   :  { %1253 = vmatmul.msk.f32.vlgmr.msra.gmra.mxu0 %vm73_vm0, %v161_v3 }
 0x135   :  { %1254 = vmatmul.msk.f32.gmra.mxu0 %vm73_vm0, %v162_v18 }
 0x1aa   :  { %v191_v20 = vpop.f32.mrf.mxu0 }
 0x1ab   :  { %v1572_v21 = vadd.f32 %v191_v20, %v167_v19 }
 0x1ad   :  { %297 = vrot.lane.b32.xlu0 %v1572_v21, %s1469_s2  ;;  %217 = vrot.lane.b32.xlu2 %v1572_v21, %s1470_s23 }
 0x1b2   :  { %v1600_v33 = vpop.f32.mrf.mxu0 }
 0x1b5   :  { %271 = vrot.lane.b32.xlu0 %v1572_v21, %s1471_s24  ;;  %299 = vrot.lane.b32.xlu2 %v1572_v21, %s1472_s25 }
 0x1bd   :  { %425 = vrot.lane.b32.xlu0 %v1572_v21, %s1473_s26 }
 0x1c5   :  { %423 = vrot.lane.b32.xlu0 %v1572_v21, %s1474_s27 }
 0x1cd   :  { %527 = vrot.lane.b32.xlu0 %v1572_v21, %s1475_s28 }
 0x207   :  { %v218_v16 = vpop.permute.xlu2 %217 }
 0x208   :  { %1255 = vmatpush.xpose.msk.msra.mxu1 %vm219_vm14, %v218_v16 }
 0x20b   :  { %1256 = vmatmul.msk.f32.vlgmr.msra.gmra.mxu1 %vm219_vm14, %v1572_v21 }
 0x20f   :  { %v300_v22 = vpop.permute.xlu2 %299 }
 0x210   :  { %1258 = vmatpush.xpose.msk.msrb.mxu0 %vm219_vm14, %v300_v22  ;;  %v1623_v22 = vld [vmem:[%s1863_s3] sm:$0xff] }
 0x211   :  { %418 = vmatpush.msra.mxu3 %v1623_v22 }
 0x21f   :  { %v298_v23 = vpop.permute.xlu0 %297 }
 0x220   :  { %1259 = vmatmul.msk.f32.vlgmr.msrb.gmra.mxu0 %vm219_vm14, %v298_v23  ;;  %v1629_v23 = vld [vmem:[%s1863_s3 + $0x8] sm:$0xff] }
 0x221   :  { %395 = vmatpush.msrb.mxu1 %v1629_v23 }
 0x227   :  { %v272_v24 = vpop.permute.xlu0 %271 }
 0x228   :  { %292 = vmatpush.msra.mxu2 %v272_v24 }
 0x22f   :  { %v426_v42 = vpop.permute.xlu0 %425 }
 0x237   :  { %v424_v45 = vpop.permute.xlu0 %423 }
 0x23f   :  { %v528_v51 = vpop.permute.xlu0 %527 }
 0x288   :  { %v241_v29 = vpop.f32.mrf.mxu1 }
 0x289   :  { %v244_v30 = vmul.f32 0.35355338, %v241_v29 }
 0x28b   :  { %v246_v31 = vadd.f32 %v1596_v28, %v244_v30 }
 0x28d   :  { %v247_v32 = vsel %vm219_vm14, %v246_v31, -inf }
 0x28e   :  { %248 = vmax.xlane.f32.xlu1 %v247_v32 }
 0x29d   :  { %v322_v34 = vpop.f32.mrf.mxu0 }
 0x29e   :  { %v325_v35 = vmul.f32 0.35355338, %v322_v34 }
 0x2a0   :  { %v326_v36 = vadd.f32 %v325_v35, %v1596_v28 }
 0x2a2   :  { %v327_v37 = vsel %vm219_vm14, %v326_v36, -inf }
 0x2a3   :  { %328 = vmax.xlane.f32.xlu2 %v327_v37 }
 0x2bb   :  { %529 = vrot.lane.b32.xlu2 %v1572_v21, %s1477_s29 }
 0x301   :  { %v249_v38 = vpop.xlane.xlu1 %248 }
 0x302   :  { %v250_v39 = vsub.f32 %v246_v31, %v249_v38 }
 0x304   :  { %v251_v40 = vmul.f32 1.442695, %v250_v39 }
 0x306   :  { %1320 = vpow2.f32 %v251_v40 }
 0x30c   :  { %v1321_v41 = vpop.eup %1320 }
 0x30d   :  { %v253_v43 = vsel %vm219_vm14, %v1321_v41, 0.0 }
 0x30e   :  { %254 = vadd.xlane.f32.xlu1 %v253_v43 }
 0x316   :  { %v329_v44 = vpop.xlane.xlu2 %328 }
 0x317   :  { %v330_v47 = vsub.f32 %v326_v36, %v329_v44 }
 0x319   :  { %v331_v48 = vmul.f32 1.442695, %v330_v47 }
 0x31b   :  { %1322 = vpow2.f32 %v331_v48 }
 0x31e   :  { %v530_v49 = vpop.permute.xlu2 %529 }
 0x31f   :  { %1267 = vmatpush.xpose.msk.msra.mxu0 %vm219_vm14, %v530_v49 }
 0x321   :  { %v1323_v50 = vpop.eup %1322 }
 0x322   :  { %1268 = vmatmul.msk.f32.vlgmr.msra.gmra.mxu0 %vm219_vm14, %v528_v51  ;;  %v333_v52 = vsel %vm219_vm14, %v1323_v50, 0.0 }
 0x323   :  { %334 = vadd.xlane.f32.xlu1 %v333_v52 }
 0x33c   :  { %351 = vrot.lane.b32.xlu1 %v1572_v21, %s1478_s30 }
 0x381   :  { %v255_v53 = vpop.xlane.xlu1 %254 }
 0x382   :  { %1324 = vrcp.f32 %v255_v53  ;;  %v267_v57 = vand.u32 2147483648, %v255_v53  ;;  %v265_v59 = vand.u32 2147483647, %v255_v53  ;;  %vm261_vm2 = vweird.f32 %v255_v53 }
 0x384   :  { %v268_v61 = vor.u32 1.1754944e-38, %v267_v57  ;;  %vm266_vm4 = vcmp.eq.f32.partialorder %v265_v59, 8.507059e+37 }
 0x388   :  { %v1325_v54 = vpop.eup %1324 }
 0x389   :  { %v257_v55 = vmul.f32 %v1325_v54, %v255_v53  ;;  %vm262_vm1 = vweird.f32 %v1325_v54 }
 0x38a   :  { %vm263_vm3 = vmor %vm261_vm2, %vm262_vm1 }
 0x38b   :  { %v258_v56 = vsub.f32 1.0, %v257_v55 }
 0x38d   :  { %v259_v58 = vmul.f32 %v1325_v54, %v258_v56  ;;  %v1644_v56 = vadd.f32 %v1600_v33, %v167_v19 }
 0x38f   :  { %v260_v60 = vadd.f32 %v1325_v54, %v259_v58  ;;  %v1651_v58 = vld [vmem:[%s1863_s3 + $0x18] sm:$0xff] }
 0x391   :  { %v264_v62 = vsel %vm263_vm3, %v1325_v54, %v260_v60 }
 0x392   :  { %v269_v63 = vsel %vm266_vm4, %v268_v61, %v264_v62 }
 0x393   :  { %v270_v1 = vmul.f32 %v1321_v41, %v269_v63 }
 0x395   :  { %1257 = vmatmul.msk.f32.vlgmr.msra.gmra.mxu2 %vm219_vm14, %v270_v1 }
 0x396   :  { %v335_v2 = vpop.xlane.xlu1 %334 }
 0x397   :  { %1326 = vrcp.f32 %v335_v2  ;;  %v347_v13 = vand.u32 2147483648, %v335_v2  ;;  %vm341_vm6 = vweird.f32 %v335_v2  ;;  %v345_v14 = vand.u32 2147483647, %v335_v2 }
 0x399   :  { %v348_v17 = vor.u32 1.1754944e-38, %v347_v13  ;;  %vm346_vm8 = vcmp.eq.f32.partialorder %v345_v14, 8.507059e+37 }
 0x39d   :  { %v1327_v3 = vpop.eup %1326 }
 0x39e   :  { %v337_v4 = vmul.f32 %v1327_v3, %v335_v2  ;;  %vm342_vm5 = vweird.f32 %v1327_v3 }
 0x39f   :  { %v552_v5 = vpop.f32.mrf.mxu0  ;;  %vm343_vm7 = vmor %vm341_vm6, %vm342_vm5 }
 0x3a0   :  { %v338_v6 = vsub.f32 1.0, %v337_v4  ;;  %v555_v7 = vmul.f32 0.35355338, %v552_v5 }
 0x3a2   :  { %v339_v8 = vmul.f32 %v1327_v3, %v338_v6  ;;  %v556_v9 = vadd.f32 %v555_v7, %v1596_v28  ;;  %v1662_v7 = vld [vmem:[%s1863_s3 + $0x10] sm:$0xff] }
 0x3a3   :  { %521 = vmatpush.msrb.mxu3 %v1662_v7 }
 0x3a4   :  { %v340_v11 = vadd.f32 %v1327_v3, %v339_v8  ;;  %v557_v12 = vsel %vm219_vm14, %v556_v9, -inf }
 0x3a5   :  { %558 = vmax.xlane.f32.xlu0 %v557_v12 }
 0x3a6   :  { %v344_v15 = vsel %vm343_vm7, %v1327_v3, %v340_v11 }
 0x3a7   :  { %v349_v18 = vsel %vm346_vm8, %v348_v17, %v344_v15  ;;  %v1683_v17 = vld [vmem:[%s1864_s4 + $0x10] sm:$0xff] }
 0x3a8   :  { %v350_v16 = vmul.f32 %v1323_v50, %v349_v18  ;;  %v1689_v18 = vld [vmem:[%s1864_s4 + $0x8] sm:$0xff] }
 0x3ae   :  { %v352_v20 = vpop.permute.xlu1 %351 }
 0x3af   :  { %372 = vmatpush.msrb.mxu2 %v352_v20  ;;  %v1696_v20 = vld [vmem:[%s1864_s4] sm:$0xff] }
 0x3b0   :  { %1260 = vmatmul.msk.f32.vlgmr.msrb.gmra.mxu2 %vm219_vm14, %v350_v16 }
 0x3b1   :  { %1263 = vmatpush.xpose.msk.msra.mxu2 %vm219_vm14, %v426_v42 }
 0x3b8   :  { %1264 = vmatmul.msk.f32.vlgmr.msra.gmra.mxu2 %vm219_vm14, %v424_v45 }
 0x3b9   :  { %477 = vrot.lane.b32.xlu0 %v1572_v21, %s1479_s8 }
 0x418   :  { %v294_v24 = vpop.f32.mrf.mxu2  ;;  %v559_v25 = vpop.xlane.xlu0 %558 }
 0x419   :  { %1262 = vmatmul.msk.f32.vlgmr.msra.gmra.mxu3 %vm219_vm14, %v294_v24  ;;  %v560_v30 = vsub.f32 %v556_v9, %v559_v25  ;;  %v1666_v9 = vperm.slane %v1593_v27, 1  ;;  %v1678_v27 = vld [vmem:[%s1864_s4 + $0x18] sm:$0xff] }
 0x41a   :  { %692 = vmatpush.msra.mxu3 %v1678_v27 }
 0x41b   :  { %v561_v31 = vmul.f32 1.442695, %v560_v30 }
 0x41c   :  { %693 = vmatpush.msra.mxu3 %v1683_v17 }
 0x41d   :  { %1328 = vpow2.f32 %v561_v31 }
 0x41e   :  { %694 = vmatpush.msra.mxu3 %v1689_v18 }
 0x420   :  { %695 = vmatpush.msra.mxu3 %v1696_v20 }
 0x423   :  { %v1329_v37 = vpop.eup %1328 }
 0x424   :  { %v563_v38 = vsel %vm219_vm14, %v1329_v37, 0.0 }
 0x42b   :  { %v478_v26 = vpop.permute.xlu0 %477 }
 0x42c   :  { %498 = vmatpush.msra.mxu1 %v478_v26 }
 0x433   :  { %v374_v29 = vpop.f32.mrf.mxu2 }
 0x434   :  { %1261 = vmatmul.msk.f32.vlgmr.msrb.gmra.mxu1 %vm219_vm14, %v374_v29 }
 0x435   :  { %625 = vmatpush.msrb.mxu1 %v1651_v58 }
 0x43b   :  { %v448_v32 = vpop.f32.mrf.mxu2 }
 0x43c   :  { %v451_v34 = vmul.f32 0.35355338, %v448_v32 }
 0x43e   :  { %v452_v35 = vadd.f32 %v451_v34, %v1596_v28  ;;  %v632_v34 = vperm.slane %v1562_v46, 1 }
 0x440   :  { %v453_v36 = vsel %vm219_vm14, %v452_v35, -inf }
 0x441   :  { %454 = vmax.xlane.f32.xlu1 %v453_v36 }
 0x449   :  { %564 = vadd.xlane.f32.xlu1 %v563_v38 }
 0x462   :  { %581 = vrot.lane.b32.xlu1 %v1572_v21, %s1480_s14 }
 0x49c   :  { %v420_v16 = vpop.f32.mrf.mxu3 }
 0x4b1   :  { %v397_v8 = vpop.f32.mrf.mxu1 }
 0x4b2   :  { %v421_v25 = vadd.f32 %v420_v16, %v397_v8 }
 0x4b4   :  { %v455_v39 = vpop.xlane.xlu1 %454 }
 0x4b5   :  { %v456_v40 = vsub.f32 %v452_v35, %v455_v39 }
 0x4b7   :  { %v457_v41 = vmul.f32 1.442695, %v456_v40 }
 0x4b9   :  { %1330 = vpow2.f32 %v457_v41 }
 0x4bc   :  { %v565_v42 = vpop.xlane.xlu1 %564 }
 0x4bd   :  { %1332 = vrcp.f32 %v565_v42  ;;  %v577_v50 = vand.u32 2147483648, %v565_v42  ;;  %vm571_vm10 = vweird.f32 %v565_v42  ;;  %v575_v51 = vand.u32 2147483647, %v565_v42 }
 0x4bf   :  { %v1331_v43 = vpop.eup %1330  ;;  %v578_v52 = vor.u32 1.1754944e-38, %v577_v50  ;;  %vm576_vm12 = vcmp.eq.f32.partialorder %v575_v51, 8.507059e+37 }
 0x4c0   :  { %v459_v28 = vsel %vm219_vm14, %v1331_v43, 0.0 }
 0x4c1   :  { %460 = vadd.xlane.f32.xlu2 %v459_v28  ;;  %v1730_v28 = vld [vmem:[%s1865_s5 + $0x28] sm:$0xff] }
 0x4c3   :  { %v1333_v44 = vpop.eup %1332 }
 0x4c4   :  { %v567_v45 = vmul.f32 %v1333_v44, %v565_v42  ;;  %vm572_vm9 = vweird.f32 %v1333_v44  ;;  %v1724_v42 = vld [vmem:[%s1865_s5 + $0x30] sm:$0xff] }
 0x4c5   :  { %vm573_vm11 = vmor %vm571_vm10, %vm572_vm9 }
 0x4c6   :  { %v568_v47 = vsub.f32 1.0, %v567_v45 }
 0x4c8   :  { %v569_v48 = vmul.f32 %v1333_v44, %v568_v47 }
 0x4ca   :  { %v570_v49 = vadd.f32 %v1333_v44, %v569_v48  ;;  %v1746_v48 = vld [vmem:[%s1865_s5 + $0x18] sm:$0xff] }
 0x4cc   :  { %v574_v21 = vsel %vm573_vm11, %v1333_v44, %v570_v49  ;;  %v1735_v44 = vld [vmem:[%s1865_s5 + $0x20] sm:$0xff]  ;;  %v1751_v49 = vld [vmem:[%s1865_s5 + $0x10] sm:$0xff] }
 0x4cd   :  { %v579_v53 = vsel %vm576_vm12, %v578_v52, %v574_v21  ;;  %v1761_v52 = vld [vmem:[%s1865_s5 + $0x8] sm:$0xff] }
 0x4ce   :  { %v580_v55 = vmul.f32 %v1329_v37, %v579_v53  ;;  %v1766_v53 = vld [vmem:[%s1865_s5] sm:$0xff] }
 0x4d4   :  { %v582_v54 = vpop.permute.xlu1 %581 }
 0x4d5   :  { %602 = vmatpush.msrb.mxu2 %v582_v54 }
 0x4d6   :  { %1269 = vmatmul.msk.f32.vlgmr.msrb.gmra.mxu2 %vm219_vm14, %v580_v55 }
 0x4d9   :  { %729 = vrot.lane.b32.xlu2 %v1644_v56, %s1470_s23 }
 0x534   :  { %v461_v57 = vpop.xlane.xlu2 %460 }
 0x535   :  { %1334 = vrcp.f32 %v461_v57  ;;  %v473_v19 = vand.u32 2147483648, %v461_v57  ;;  %v471_v63 = vand.u32 2147483647, %v461_v57  ;;  %vm467_vm15 = vweird.f32 %v461_v57 }
 0x537   :  { %v474_v2 = vor.u32 1.1754944e-38, %v473_v19  ;;  %vm472_vm2 = vcmp.eq.f32.partialorder %v471_v63, 8.507059e+37 }
 0x53b   :  { %v1335_v59 = vpop.eup %1334 }
 0x53c   :  { %v463_v60 = vmul.f32 %v1335_v59, %v461_v57  ;;  %v730_v61 = vpop.permute.xlu2 %729  ;;  %vm468_vm13 = vweird.f32 %v1335_v59 }
 0x53d   :  { %1273 = vmatpush.xpose.msk.msra.mxu2 %vm219_vm14, %v730_v61  ;;  %vm469_vm1 = vmor %vm467_vm15, %vm468_vm13  ;;  %vm702_vm13 = vcmask 523264  }
 0x53e   :  { %v464_v62 = vsub.f32 1.0, %v463_v60 }
 0x540   :  { %v465_v33 = vmul.f32 %v1335_v59, %v464_v62  ;;  %1274 = vmatmul.msk.f32.vlgmr.msra.gmra.mxu2 %vm219_vm14, %v1644_v56 }
 0x542   :  { %v466_v1 = vadd.f32 %v1335_v59, %v465_v33 }
 0x544   :  { %v470_v3 = vsel %vm469_vm1, %v1335_v59, %v466_v1 }
 0x545   :  { %v475_v4 = vsel %vm472_vm2, %v474_v2, %v470_v3 }
 0x546   :  { %v476_v5 = vmul.f32 %v1331_v43, %v475_v4 }
 0x548   :  { %1265 = vmatmul.msk.f32.vlgmr.msra.gmra.mxu1 %vm219_vm14, %v476_v5 }
 0x559   :  { %v604_v6 = vpop.f32.mrf.mxu2 }
 0x55a   :  { %1270 = vmatmul.msk.f32.vlgmr.msrb.gmra.mxu1 %vm219_vm14, %v604_v6 }
 0x5c3   :  { %v752_v11 = vpop.f32.mrf.mxu2 }
 0x5c4   :  { %v755_v12 = vmul.f32 0.35355338, %v752_v11 }
 0x5c5   :  { %v500_v13 = vpop.f32.mrf.mxu1 }
 0x5c6   :  { %1266 = vmatmul.msk.f32.vlgmr.msrb.gmra.mxu3 %vm219_vm14, %v500_v13  ;;  %v757_v14 = vadd.f32 %v1666_v9, %v755_v12 }
 0x5c8   :  { %v758_v15 = vsel %vm219_vm14, %v757_v14, -inf }
 0x5c9   :  { %759 = vmax.xlane.f32.xlu1 %v758_v15 }
 0x5d7   :  { %v627_v31 = vpop.f32.mrf.mxu1 }
 0x5e2   :  { %810 = vrot.lane.b32.xlu1 %v1644_v56, %s1472_s25 }
 0x5ea   :  { %1038 = vrot.lane.b32.xlu1 %v1644_v56, %s1475_s28 }
 0x63c   :  { %v760_v24 = vpop.xlane.xlu1 %759 }
 0x63d   :  { %v761_v26 = vsub.f32 %v757_v14, %v760_v24 }
 0x63f   :  { %v762_v35 = vmul.f32 1.442695, %v761_v26 }
 0x641   :  { %1336 = vpow2.f32 %v762_v35 }
 0x647   :  { %v1337_v40 = vpop.eup %1336 }
 0x648   :  { %v764_v41 = vsel %vm219_vm14, %v1337_v40, 0.0 }
 0x649   :  { %v523_v29 = vpop.f32.mrf.mxu3 }
 0x64a   :  { %v526_v30 = vadd.f32 %v523_v29, %v421_v25 }
 0x64c   :  { %v630_v32 = vadd.f32 %v627_v31, %v526_v30 }
 0x64e   :  { %v631_v36 = vadd.f32 %v630_v32, %v1534_v0  ;;  %v1718_v0 = vld [vmem:[%s1865_s5 + $0x38] sm:$0xff]  ;;  %v656_v32 = vperm.slane %v1562_v46, 4  ;;  %s1481_s5 = smov [#allocation8]  }
 0x64f   :  { %714 = vmatpush.msrb.mxu0 %v1718_v0 }
 0x650   :  { %v1703_v37 = vadd.f32 %v632_v34, %v631_v36 }
 0x651   :  { %715 = vmatpush.msrb.mxu0 %v1724_v42 }
 0x652   :  { %v634_v38 = vsel %vm73_vm0, %v1703_v37, 0.0 }
 0x653   :  { %635 = vadd.xlane.f32.xlu0 %v634_v38  ;;  %716 = vmatpush.msrb.mxu0 %v1730_v28 }
 0x654   :  { %v811_v39 = vpop.permute.xlu1 %810 }
 0x655   :  { %1276 = vmatpush.xpose.msk.msrb.mxu3 %vm219_vm14, %v811_v39  ;;  %717 = vmatpush.msrb.mxu0 %v1735_v44 }
 0x657   :  { %718 = vmatpush.msrb.mxu0 %v1746_v48 }
 0x659   :  { %719 = vmatpush.msrb.mxu0 %v1751_v49 }
 0x65b   :  { %765 = vadd.xlane.f32.xlu0 %v764_v41  ;;  %720 = vmatpush.msrb.mxu0 %v1761_v52 }
 0x65d   :  { %721 = vmatpush.msrb.mxu0 %v1766_v53 }
 0x66f   :  { %782 = vrot.lane.b32.xlu0 %v1644_v56, %s1471_s24 }
 0x677   :  { %1040 = vrot.lane.b32.xlu0 %v1644_v56, %s1477_s29 }
 0x67f   :  { %936 = vrot.lane.b32.xlu0 %v1644_v56, %s1473_s26 }
 0x6c6   :  { %v636_v43 = vpop.xlane.xlu0 %635 }
 0x6c7   :  { %v637_v45 = vmul.f32 %v636_v43, %v1539_v10  ;;  %v674_v43 = vperm.slane %v1562_v46, 5 }
 0x6c9   :  { %v1740_v47 = vsub.f32 %v1703_v37, %v637_v45 }
 0x6cb   :  { %v639_v50 = vmul.f32 %v1740_v47, %v1740_v47 }
 0x6cd   :  { %v640_v51 = vsel %vm73_vm0, %v639_v50, 0.0 }
 0x6ce   :  { %641 = vadd.xlane.f32.xlu2 %v640_v51  ;;  %v766_v21 = vpop.xlane.xlu0 %765 }
 0x6cf   :  { %1338 = vrcp.f32 %v766_v21  ;;  %v778_v59 = vand.u32 2147483648, %v766_v21  ;;  %v776_v61 = vand.u32 2147483647, %v766_v21  ;;  %vm772_vm4 = vweird.f32 %v766_v21 }
 0x6d1   :  { %v779_v19 = vor.u32 1.1754944e-38, %v778_v59  ;;  %vm777_vm6 = vcmp.eq.f32.partialorder %v776_v61, 8.507059e+37 }
 0x6d5   :  { %v1339_v54 = vpop.eup %1338 }
 0x6d6   :  { %v768_v55 = vmul.f32 %v1339_v54, %v766_v21  ;;  %vm773_vm3 = vweird.f32 %v1339_v54 }
 0x6d7   :  { %vm774_vm5 = vmor %vm772_vm4, %vm773_vm3 }
 0x6d8   :  { %v769_v57 = vsub.f32 1.0, %v768_v55 }
 0x6da   :  { %v770_v60 = vmul.f32 %v1339_v54, %v769_v57 }
 0x6dc   :  { %v771_v62 = vadd.f32 %v1339_v54, %v770_v60 }
 0x6de   :  { %v775_v33 = vsel %vm774_vm5, %v1339_v54, %v771_v62  ;;  %v701_v62 = vperm.slane %v1562_v46, 7 }
 0x6df   :  { %v780_v63 = vsel %vm777_vm6, %v779_v19, %v775_v33 }
 0x6e0   :  { %v781_v1 = vmul.f32 %v1337_v40, %v780_v63  ;;  %v657_v40 = vmul.f32 %v656_v32, %v1740_v47  ;;  %v1039_v47 = vpop.permute.xlu1 %1038 }
 0x6e1   :  { %v783_v2 = vpop.permute.xlu0 %782 }
 0x6e2   :  { %803 = vmatpush.msra.mxu1 %v783_v2 }
 0x6e3   :  { %1275 = vmatmul.msk.f32.vlgmr.msra.gmra.mxu1 %vm219_vm14, %v781_v1 }
 0x6e4   :  { %906 = vmatpush.msrb.mxu1 %v1629_v23 }
 0x6e6   :  { %1032 = vmatpush.msra.mxu1 %v1662_v7  ;;  %808 = vrot.lane.b32.xlu2 %v1644_v56, %s1469_s2  ;;  %s1237_s2 = sshll.u32 %s1481_s5, 4  ;;  %s1238_s2 = int_to_ptr.vmem [resolvable:$true] %s1237_s2 }
 0x6e9   :  { %v1041_v3 = vpop.permute.xlu0 %1040 }
 0x6ee   :  { %934 = vrot.lane.b32.xlu2 %v1644_v56, %s1474_s27 }
 0x6f1   :  { %v937_v4 = vpop.permute.xlu0 %936 }
 0x6f2   :  { %1281 = vmatpush.xpose.msk.msra.mxu0 %vm219_vm14, %v937_v4 }
 0x741   :  { %v642_v5 = vpop.xlane.xlu2 %641 }
 0x742   :  { %v643_v6 = vmul.f32 0.032258064, %v642_v5 }
 0x744   :  { %1340 = vrsqrt.f32 %v643_v6  ;;  %vm651_vm7 = vcmp.eq.f32.partialorder %v643_v6, inf  ;;  %v654_v15 = vand.u32 2147483648, %v643_v6  ;;  %vm653_vm8 = vcmp.eq.f32.partialorder %v643_v6, 0.0 }
 0x749   :  { %v809_v21 = vpop.permute.xlu2 %808 }
 0x74a   :  { %v1341_v8 = vpop.eup %1340 }
 0x74b   :  { %v645_v11 = vmul.f32 %v1341_v8, %v643_v6 }
 0x74d   :  { %v646_v12 = vmul.f32 %v1341_v8, %v645_v11 }
 0x74f   :  { %v647_v13 = vmul.f32 0.5, %v646_v12 }
 0x751   :  { %v648_v23 = vsub.f32 1.5, %v647_v13  ;;  %v935_v57 = vpop.permute.xlu2 %934 }
 0x753   :  { %v649_v14 = vmul.f32 %v1341_v8, %v648_v23 }
 0x755   :  { %v650_v7 = vmul.f32 %v649_v14, %v643_v6 }
 0x757   :  { %v652_v16 = vsel %vm651_vm7, %v643_v6, %v650_v7 }
 0x758   :  { %v655_v24 = vsel %vm653_vm8, %v654_v15, %v652_v16 }
 0x759   :  { %v658_v25 = vadd.f32 1e-06, %v655_v24 }
 0x75b   :  { %1342 = vrcp.f32 %v658_v25  ;;  %v670_v31 = vand.u32 2147483648, %v658_v25  ;;  %v668_v36 = vand.u32 2147483647, %v658_v25  ;;  %vm664_vm10 = vweird.f32 %v658_v25 }
 0x75d   :  { %v671_v39 = vor.u32 1.1754944e-38, %v670_v31  ;;  %vm669_vm12 = vcmp.eq.f32.partialorder %v668_v36, 8.507059e+37 }
 0x760   :  { %v805_v54 = vpop.f32.mrf.mxu1 }
 0x761   :  { %v1343_v26 = vpop.eup %1342 }
 0x762   :  { %v660_v29 = vmul.f32 %v1343_v26, %v658_v25  ;;  %vm665_vm9 = vweird.f32 %v1343_v26 }
 0x763   :  { %vm666_vm11 = vmor %vm664_vm10, %vm665_vm9 }
 0x764   :  { %v661_v30 = vsub.f32 1.0, %v660_v29 }
 0x766   :  { %v662_v35 = vmul.f32 %v1343_v26, %v661_v30 }
 0x768   :  { %v663_v38 = vadd.f32 %v1343_v26, %v662_v35 }
 0x76a   :  { %v667_v41 = vsel %vm666_vm11, %v1343_v26, %v663_v38 }
 0x76b   :  { %v672_v45 = vsel %vm669_vm12, %v671_v39, %v667_v41 }
 0x76c   :  { %v673_v50 = vmul.f32 %v672_v45, %v657_v40 }
 0x76e   :  { %v675_v51 = vadd.f32 %v674_v43, %v673_v50 }
 0x770   :  { %1271 = vmatmul.msk.f32.vlgmr.msra.gmra.mxu3 %vm73_vm0, %v675_v51 }
 0x771   :  { %929 = vmatpush.msra.mxu3 %v1623_v22  ;;  %v676_v22 = vperm.slane %v1562_v46, 6 }
 0x778   :  { %1277 = vmatmul.msk.f32.vlgmr.msrb.gmra.mxu3 %vm219_vm14, %v809_v21 }
 0x779   :  { %1285 = vmatpush.xpose.msk.msrb.mxu3 %vm219_vm14, %v1041_v3 }
 0x780   :  { %1280 = vmatmul.msk.f32.vlgmr.msra.gmra.mxu3 %vm219_vm14, %v805_v54 }
 0x781   :  { %1219 = vmatpush.msra.mxu3 %v1718_v0 }
 0x783   :  { %1220 = vmatpush.msra.mxu3 %v1724_v42 }
 0x785   :  { %1221 = vmatpush.msra.mxu3 %v1730_v28 }
 0x787   :  { %1222 = vmatpush.msra.mxu3 %v1735_v44 }
 0x788   :  { %1286 = vmatmul.msk.f32.vlgmr.msrb.gmra.mxu3 %vm219_vm14, %v1039_v47 }
 0x789   :  { %1223 = vmatpush.msra.mxu3 %v1746_v48 }
 0x78b   :  { %1224 = vmatpush.msra.mxu3 %v1751_v49 }
 0x78d   :  { %1225 = vmatpush.msra.mxu3 %v1761_v52 }
 0x78f   :  { %1226 = vmatpush.msra.mxu3 %v1766_v53 }
 0x7f3   :  { %v697_v0 = vpop.f32.mrf.mxu3 }
 0x7f4   :  { %v698_v42 = vadd.f32 %v697_v0, %v676_v22 }
 0x7f6   :  { %v700_v28 = vmax.f32 %v698_v42, 0.0 }
 0x7f8   :  { %1272 = vmatmul.msk.f32.vlgmr.msrb.gmra.mxu0 %vm702_vm13, %v700_v28 }
 0x7fb   :  { %v833_v44 = vpop.f32.mrf.mxu3 }
 0x7fc   :  { %v836_v55 = vmul.f32 0.35355338, %v833_v44 }
 0x7fe   :  { %v837_v48 = vadd.f32 %v836_v55, %v1666_v9 }
 0x800   :  { %1282 = vmatmul.msk.f32.vlgmr.msra.gmra.mxu0 %vm219_vm14, %v935_v57  ;;  %v838_v49 = vsel %vm219_vm14, %v837_v48, -inf }
 0x801   :  { %839 = vmax.xlane.f32.xlu1 %v838_v49 }
 0x803   :  { %v1806_v52 = vpop.f32.mrf.mxu3 }
 0x80b   :  { %v1063_v53 = vpop.f32.mrf.mxu3 }
 0x80c   :  { %v1066_v59 = vmul.f32 0.35355338, %v1063_v53 }
 0x80e   :  { %v1067_v60 = vadd.f32 %v1066_v59, %v1666_v9 }
 0x810   :  { %v1068_v61 = vsel %vm219_vm14, %v1067_v60, -inf }
 0x811   :  { %1069 = vmax.xlane.f32.xlu2 %v1068_v61 }
 0x874   :  { %v840_v19 = vpop.xlane.xlu1 %839 }
 0x875   :  { %v841_v33 = vsub.f32 %v837_v48, %v840_v19  ;;  %v723_v63 = vpop.f32.mrf.mxu0 }
 0x876   :  { %v724_v1 = vadd.f32 %v723_v63, %v701_v62 }
 0x877   :  { %v842_v2 = vmul.f32 1.442695, %v841_v33 }
 0x878   :  { %v726_v3 = vadd.f32 %v724_v1, %v1703_v37 }
 0x879   :  { %1344 = vpow2.f32 %v842_v2 }
 0x87a   :  { %727 = vst.msk [vmem:[#allocation8] sm:$0xff] %vm73_vm0, %v726_v3 }
 0x87d   :  { %v959_v4 = vpop.f32.mrf.mxu0 }
 0x87e   :  { %v962_v5 = vmul.f32 0.35355338, %v959_v4 }
 0x87f   :  { %v1345_v6 = vpop.eup %1344 }
 0x880   :  { %v844_v8 = vsel %vm219_vm14, %v1345_v6, 0.0  ;;  %v963_v11 = vadd.f32 %v962_v5, %v1666_v9 }
 0x881   :  { %845 = vadd.xlane.f32.xlu1 %v844_v8 }
 0x882   :  { %v964_v12 = vsel %vm219_vm14, %v963_v11, -inf }
 0x883   :  { %965 = vmax.xlane.f32.xlu0 %v964_v12 }
 0x884   :  { %v1070_v13 = vpop.xlane.xlu2 %1069 }
 0x885   :  { %v1071_v23 = vsub.f32 %v1067_v60, %v1070_v13 }
 0x887   :  { %v1072_v14 = vmul.f32 1.442695, %v1071_v23 }
 0x889   :  { %1346 = vpow2.f32 %v1072_v14 }
 0x88f   :  { %v1347_v7 = vpop.eup %1346 }
 0x890   :  { %v1074_v37 = vsel %vm219_vm14, %v1347_v7, 0.0 }
 0x891   :  { %1075 = vadd.xlane.f32.xlu2 %v1074_v37 }
 0x89a   :  { %862 = vrot.lane.b32.xlu1 %v1644_v56, %s1478_s30 }
 0x8a9   :  { %1092 = vrot.lane.b32.xlu2 %v1644_v56, %s1480_s14 }
 0x8f4   :  { %v846_v15 = vpop.xlane.xlu1 %845 }
 0x8f5   :  { %1348 = vrcp.f32 %v846_v15  ;;  %v858_v38 = vand.u32 2147483648, %v846_v15  ;;  %vm852_vm1 = vweird.f32 %v846_v15  ;;  %v856_v39 = vand.u32 2147483647, %v846_v15 }
 0x8f6   :  { %v966_v9 = vpop.xlane.xlu0 %965 }
 0x8f7   :  { %v967_v16 = vsub.f32 %v963_v11, %v966_v9  ;;  %v859_v45 = vor.u32 1.1754944e-38, %v858_v38  ;;  %vm857_vm3 = vcmp.eq.f32.partialorder %v856_v39, 8.507059e+37 }
 0x8f9   :  { %v968_v24 = vmul.f32 1.442695, %v967_v16 }
 0x8fb   :  { %v1349_v25 = vpop.eup %1348  ;;  %1350 = vpow2.f32 %v968_v24 }
 0x8fc   :  { %v848_v26 = vmul.f32 %v1349_v25, %v846_v15  ;;  %vm853_vm15 = vweird.f32 %v1349_v25 }
 0x8fd   :  { %vm854_vm2 = vmor %vm852_vm1, %vm853_vm15 }
 0x8fe   :  { %v849_v29 = vsub.f32 1.0, %v848_v26 }
 0x900   :  { %v850_v30 = vmul.f32 %v1349_v25, %v849_v29 }
 0x901   :  { %v1351_v31 = vpop.eup %1350 }
 0x902   :  { %v851_v35 = vadd.f32 %v1349_v25, %v850_v30  ;;  %v970_v36 = vsel %vm219_vm14, %v1351_v31, 0.0 }
 0x903   :  { %971 = vadd.xlane.f32.xlu0 %v970_v36 }
 0x904   :  { %v1076_v40 = vpop.xlane.xlu2 %1075  ;;  %v855_v41 = vsel %vm854_vm2, %v1349_v25, %v851_v35 }
 0x905   :  { %1352 = vrcp.f32 %v1076_v40  ;;  %v860_v50 = vsel %vm857_vm3, %v859_v45, %v855_v41  ;;  %v1088_v28 = vand.u32 2147483648, %v1076_v40  ;;  %v1086_v55 = vand.u32 2147483647, %v1076_v40 }
 0x906   :  { %v861_v0 = vmul.f32 %v1345_v6, %v860_v50  ;;  %vm1082_vm5 = vweird.f32 %v1076_v40 }
 0x907   :  { %v1089_v57 = vor.u32 1.1754944e-38, %v1088_v28  ;;  %vm1087_vm7 = vcmp.eq.f32.partialorder %v1086_v55, 8.507059e+37 }
 0x90b   :  { %v1353_v51 = vpop.eup %1352 }
 0x90c   :  { %v1078_v21 = vmul.f32 %v1353_v51, %v1076_v40  ;;  %v863_v54 = vpop.permute.xlu1 %862  ;;  %v1093_v47 = vpop.permute.xlu2 %1092  ;;  %vm1083_vm4 = vweird.f32 %v1353_v51 }
 0x90d   :  { %883 = vmatpush.msrb.mxu2 %v863_v54  ;;  %1113 = vmatpush.msrb.mxu0 %v1093_v47  ;;  %vm1084_vm6 = vmor %vm1082_vm5, %vm1083_vm4 }
 0x90e   :  { %v1079_v42 = vsub.f32 1.0, %v1078_v21  ;;  %1278 = vmatmul.msk.f32.vlgmr.msrb.gmra.mxu2 %vm219_vm14, %v861_v0 }
 0x910   :  { %v1080_v44 = vmul.f32 %v1353_v51, %v1079_v42 }
 0x912   :  { %v1081_v48 = vadd.f32 %v1353_v51, %v1080_v44 }
 0x914   :  { %v1085_v49 = vsel %vm1084_vm6, %v1353_v51, %v1081_v48 }
 0x915   :  { %v1090_v53 = vsel %vm1087_vm7, %v1089_v57, %v1085_v49 }
 0x916   :  { %v1091_v59 = vmul.f32 %v1347_v7, %v1090_v53 }
 0x917   :  { %988 = vrot.lane.b32.xlu0 %v1644_v56, %s1479_s8  ;;  %s1239_s8 = sshll.u32 %s1867_s7, 4  ;;  %s1240_s8 = int_to_ptr.hbm [resolvable:$true] %s1239_s8 }
 0x918   :  { %1287 = vmatmul.msk.f32.vlgmr.msrb.gmra.mxu0 %vm219_vm14, %v1091_v59 }
 0x976   :  { %v972_v60 = vpop.xlane.xlu0 %971 }
 0x977   :  { %1354 = vrcp.f32 %v972_v60  ;;  %v984_v63 = vand.u32 2147483648, %v972_v60  ;;  %v982_v2 = vand.u32 2147483647, %v972_v60  ;;  %vm978_vm9 = vweird.f32 %v972_v60 }
 0x979   :  { %v985_v4 = vor.u32 1.1754944e-38, %v984_v63  ;;  %vm983_vm11 = vcmp.eq.f32.partialorder %v982_v2, 8.507059e+37 }
 0x97d   :  { %v1355_v61 = vpop.eup %1354 }
 0x97e   :  { %v974_v19 = vmul.f32 %v1355_v61, %v972_v60  ;;  %vm979_vm8 = vweird.f32 %v1355_v61 }
 0x97f   :  { %vm980_vm10 = vmor %vm978_vm9, %vm979_vm8 }
 0x980   :  { %v975_v33 = vsub.f32 1.0, %v974_v19 }
 0x982   :  { %v976_v1 = vmul.f32 %v1355_v61, %v975_v33 }
 0x984   :  { %v977_v3 = vadd.f32 %v1355_v61, %v976_v1 }
 0x986   :  { %v981_v5 = vsel %vm980_vm10, %v1355_v61, %v977_v3 }
 0x987   :  { %v986_v6 = vsel %vm983_vm11, %v985_v4, %v981_v5 }
 0x988   :  { %v987_v8 = vmul.f32 %v1351_v31, %v986_v6 }
 0x989   :  { %v989_v56 = vpop.permute.xlu0 %988 }
 0x98a   :  { %1009 = vmatpush.msra.mxu2 %v989_v56 }
 0x98b   :  { %1283 = vmatmul.msk.f32.vlgmr.msra.gmra.mxu2 %vm219_vm14, %v987_v8 }
 0x98c   :  { %1136 = vmatpush.msrb.mxu2 %v1651_v58 }
 0x991   :  { %v885_v11 = vpop.f32.mrf.mxu2 }
 0x992   :  { %1279 = vmatmul.msk.f32.vlgmr.msrb.gmra.mxu1 %vm219_vm14, %v885_v11 }
 0x993   :  { %1199 = vmatpush.msrb.mxu1 %v1678_v27  ;;  %v1360_v27 = vld [vmem:[#allocation5 + $0x8] sm:$0xff] }
 0x995   :  { %v1115_v12 = vpop.f32.mrf.mxu0  ;;  %1200 = vmatpush.msrb.mxu1 %v1683_v17 }
 0x996   :  { %1288 = vmatmul.msk.f32.vlgmr.msrb.gmra.mxu2 %vm219_vm14, %v1115_v12 }
 0x997   :  { %1201 = vmatpush.msrb.mxu1 %v1689_v18 }
 0x999   :  { %1202 = vmatpush.msrb.mxu1 %v1696_v20 }
 0xa0e   :  { %v1011_v13 = vpop.f32.mrf.mxu2 }
 0xa0f   :  { %1284 = vmatmul.msk.f32.vlgmr.msra.gmra.mxu1 %vm219_vm14, %v1011_v13  ;;  %v908_v23 = vpop.f32.mrf.mxu1 }
 0xa10   :  { %v932_v58 = vadd.f32 %v1806_v52, %v908_v23 }
 0xa19   :  { %v1138_v37 = vpop.f32.mrf.mxu2 }
 0xa8c   :  { %v1034_v14 = vpop.f32.mrf.mxu1 }
 0xa8d   :  { %v1037_v7 = vadd.f32 %v1034_v14, %v932_v58 }
 0xa8f   :  { %v1141_v15 = vadd.f32 %v1138_v37, %v1037_v7 }
 0xa91   :  { %v1142_v9 = vadd.f32 %v1360_v27, %v1141_v15 }
 0xa93   :  { %v1143_v17 = vadd.f32 %v1142_v9, %v632_v34 }
 0xa95   :  { %v1144_v16 = vsel %vm73_vm0, %v1143_v17, 0.0 }
 0xa96   :  { %1145 = vadd.xlane.f32.xlu0 %v1144_v16 }
 0xb09   :  { %v1146_v18 = vpop.xlane.xlu0 %1145 }
 0xb0a   :  { %v1147_v20 = vmul.f32 %v1146_v18, %v1539_v10 }
 0xb0c   :  { %v1148_v24 = vsub.f32 %v1143_v17, %v1147_v20 }
 0xb0e   :  { %v1149_v25 = vmul.f32 %v1148_v24, %v1148_v24  ;;  %v1166_v44 = vmul.f32 %v1148_v24, %v656_v32 }
 0xb10   :  { %v1150_v26 = vsel %vm73_vm0, %v1149_v25, 0.0 }
 0xb11   :  { %1151 = vadd.xlane.f32.xlu1 %v1150_v26 }
 0xb84   :  { %v1152_v52 = vpop.xlane.xlu1 %1151 }
 0xb85   :  { %v1153_v29 = vmul.f32 0.032258064, %v1152_v52 }
 0xb87   :  { %1356 = vrsqrt.f32 %v1153_v29  ;;  %vm1161_vm14 = vcmp.eq.f32.partialorder %v1153_v29, inf  ;;  %v1164_v40 = vand.u32 2147483648, %v1153_v29  ;;  %vm1163_vm12 = vcmp.eq.f32.partialorder %v1153_v29, 0.0 }
 0xb8d   :  { %v1357_v30 = vpop.eup %1356 }
 0xb8e   :  { %v1155_v31 = vmul.f32 %v1357_v30, %v1153_v29 }
 0xb90   :  { %v1156_v35 = vmul.f32 %v1357_v30, %v1155_v31 }
 0xb92   :  { %v1157_v36 = vmul.f32 0.5, %v1156_v35 }
 0xb94   :  { %v1158_v38 = vsub.f32 1.5, %v1157_v36 }
 0xb96   :  { %v1159_v34 = vmul.f32 %v1357_v30, %v1158_v38 }
 0xb98   :  { %v1160_v39 = vmul.f32 %v1159_v34, %v1153_v29 }
 0xb9a   :  { %v1162_v41 = vsel %vm1161_vm14, %v1153_v29, %v1160_v39 }
 0xb9b   :  { %v1165_v10 = vsel %vm1163_vm12, %v1164_v40, %v1162_v41 }
 0xb9c   :  { %v1167_v45 = vadd.f32 1e-06, %v1165_v10 }
 0xb9e   :  { %1358 = vrcp.f32 %v1167_v45  ;;  %v1179_v54 = vand.u32 2147483648, %v1167_v45  ;;  %v1177_v0 = vand.u32 2147483647, %v1167_v45  ;;  %vm1173_vm1 = vweird.f32 %v1167_v45 }
 0xba0   :  { %v1180_v28 = vor.u32 1.1754944e-38, %v1179_v54  ;;  %vm1178_vm3 = vcmp.eq.f32.partialorder %v1177_v0, 8.507059e+37 }
 0xba4   :  { %v1359_v50 = vpop.eup %1358 }
 0xba5   :  { %v1169_v51 = vmul.f32 %v1359_v50, %v1167_v45  ;;  %vm1174_vm15 = vweird.f32 %v1359_v50 }
 0xba6   :  { %vm1175_vm2 = vmor %vm1173_vm1, %vm1174_vm15 }
 0xba7   :  { %v1170_v21 = vsub.f32 1.0, %v1169_v51 }
 0xba9   :  { %v1171_v47 = vmul.f32 %v1359_v50, %v1170_v21 }
 0xbab   :  { %v1172_v42 = vadd.f32 %v1359_v50, %v1171_v47 }
 0xbad   :  { %v1176_v55 = vsel %vm1175_vm2, %v1359_v50, %v1172_v42 }
 0xbae   :  { %v1181_v48 = vsel %vm1178_vm3, %v1180_v28, %v1176_v55 }
 0xbaf   :  { %v1182_v57 = vmul.f32 %v1181_v48, %v1166_v44 }
 0xbb1   :  { %v1183_v49 = vadd.f32 %v1182_v57, %v674_v43 }
 0xbb3   :  { %1289 = vmatmul.msk.f32.vlgmr.msrb.gmra.mxu1 %vm73_vm0, %v1183_v49 }
 0xc30   :  { %v1204_v53 = vpop.f32.mrf.mxu1 }
 0xc31   :  { %v1205_v59 = vadd.f32 %v1204_v53, %v676_v22 }
 0xc33   :  { %v1207_v60 = vmax.f32 %v1205_v59, 0.0 }
 0xc35   :  { %1290 = vmatmul.msk.f32.vlgmr.msra.gmra.mxu3 %vm702_vm13, %v1207_v60 }
 0xcb8   :  { %v1228_v61 = vpop.f32.mrf.mxu3 }
 0xcb9   :  { %v1229_v32 = vadd.f32 %v1228_v61, %v701_v62 }
 0xcbb   :  { %v1231_v43 = vadd.f32 %v1229_v32, %v1143_v17 }
 0xcbd   :  { %1232 = vst.msk [vmem:[#allocation8 + $0x8] sm:$0xff] %vm73_vm0, %v1231_v43 }
 0xcbe   :  { %1245 = dma.vmem_to_hbm [thread:$0]  %s1238_s2, 256, %s1240_s8, [#allocation4], %s1464_s9, %s1464_s9, %s1465_s10  }
 0xcbf   :  { %1461 = dma.done.wait [#allocation4], 256  }
 0xcc0   :  { %1462 = vsyncadd [#allocation4], 4294967040 }
 0xcc1   :  { %1250 = vsyncpa [#allocation3], 1 }
 0xcc2   :  { %1251 = vsyncpa [#allocation6], 1 }
 0xcc3   :  { %1252 = vsyncpa [#allocation4], 1 }

</bundles_post_ra>
